<compile_context>
chip_gen: v5e
topology: v5e:2x2
jax: 0.10.0
libtpu: 0.0.40
codegen_flags: <defaults>
</compile_context>

<pallas_src>
import numpy as np
import jax
import jax.numpy as jnp
from jax import lax
from jax.experimental import pallas as pl
from jax.experimental.pallas import tpu as pltpu


# ---------------------------------------------------------------------------
# Host-side constant construction
# ---------------------------------------------------------------------------
def _bilinear_matrix_np(in_size: int, out_size: int) -> np.ndarray:
    """Interpolation matrix (out_size, in_size), PyTorch align_corners=True."""
    if out_size == 1:
        src = np.zeros((1,), np.float64)
    else:
        src = np.arange(out_size, dtype=np.float64) * (in_size - 1) / (out_size - 1)
    i0 = np.clip(np.floor(src).astype(np.int64), 0, in_size - 1)
    i1 = np.minimum(i0 + 1, in_size - 1)
    w1 = (src - i0).astype(np.float32)
    w0 = (1.0 - w1).astype(np.float32)
    M = np.zeros((out_size, in_size), np.float32)
    M[np.arange(out_size), i0] += w0
    M[np.arange(out_size), i1] += w1
    return M


def _tap_masks_np(Ho: int, Wo: int, B: int) -> np.ndarray:
    """(9, 1, B*Ho*Wo) validity masks for the zero-padded 3x3 taps on a
    row-major flattened spatial axis, tiled per image (also kills the
    cross-image wraparound introduced by folding the batch into lanes)."""
    S = Ho * Wo
    ii, jj = np.divmod(np.arange(S), Wo)
    m = np.zeros((9, 1, S), np.float32)
    for ky in range(3):
        for kx in range(3):
            dy, dx = ky - 1, kx - 1
            ok = (ii + dy >= 0) & (ii + dy < Ho) & (jj + dx >= 0) & (jj + dx < Wo)
            m[ky * 3 + kx, 0, :] = ok.astype(np.float32)
    return np.tile(m, (1, 1, B))


def _vmem_limit_bytes() -> int:
    """Explicit scoped-VMEM limit (defaults are only 16/32 MiB), re-derived per
    TPU generation; leaves ~12% headroom and never exceeds 110 MiB."""
    try:
        cap = pltpu.get_tpu_info().vmem_capacity_bytes
    except Exception:
        cap = 64 * 1024 * 1024          # conservative (v7x-sized) fallback
    return int(min(cap * 7 // 8, 110 * 1024 * 1024))


# ---------------------------------------------------------------------------
# Fused Up.forward
# ---------------------------------------------------------------------------
def up_forward(params, x1, x2, block_n=None):
    """x1: (N, c1, H, W) low-res, x2: (N, c2, Ho, Wo) skip; NCHW in / NCHW out."""
    N, c1, H, W = x1.shape
    N2, c2, Ho, Wo = x2.shape
    assert N == N2
    w1, b1, w2, b2 = params["w1"], params["b1"], params["w2"], params["b2"]
    Cout = w1.shape[0]
    Cin = c1 + c2
    assert w1.shape == (Cout, Cin, 3, 3) and w2.shape == (Cout, Cout, 3, 3)
    S = Ho * Wo

    # ---- per-grid-step batch: amortize the ~0.35us/step overhead but keep
    #      >= 2 grid steps so the parallel axis can split across v7x's 2 TCs.
    if block_n is None:
        block_n = N // 2 if (N >= 2 and N % 2 == 0) else 1
    B = block_n
    assert N % B == 0
    G = N // B
    BS = B * S
    f32, bf16 = jnp.float32, jnp.bfloat16

    # ---- separable bilinear x2 upsample operators with F.pad folded in as
    #      zero rows (left/top offsets match F.pad([dX//2, ..., dY//2, ...])).
    H2, W2 = 2 * H, 2 * W
    diffY, diffX = Ho - H2, Wo - W2
    assert diffY >= 0 and diffX >= 0, "skip connection must be >= 2x upsampled size"
    pt, plft = diffY // 2, diffX // 2
    uy_pad = np.zeros((Ho, H), np.float32)
    uy_pad[pt:pt + H2, :] = _bilinear_matrix_np(H, H2)
    ux_pad = np.zeros((Wo, W), np.float32)
    ux_pad[plft:plft + W2, :] = _bilinear_matrix_np(W, W2)
    uxpT = jnp.asarray(ux_pad.T, dtype=bf16)                                  # (W, Wo)
    uyb = jnp.asarray(np.ascontiguousarray(
        np.broadcast_to(uy_pad, (c1 * B, Ho, H))), dtype=bf16)                # (c1*B, Ho, H)

    masks = jnp.asarray(_tap_masks_np(Ho, Wo, B))                             # (9, 1, BS)

    # ---- conv weights in im2col order: row = tap*Cin + in_channel.
    #      torch.cat([x2, x1], dim=1) order is already the torch weight's
    #      in-channel order, so no split is needed (merged concat).
    w1m = jnp.transpose(w1, (0, 2, 3, 1)).reshape(Cout, 9 * Cin).astype(bf16)
    w2m = jnp.transpose(w2, (0, 2, 3, 1)).reshape(Cout, 9 * Cout).astype(bf16)
    b1c = b1.reshape(Cout, 1).astype(f32)
    b2c = b2.reshape(Cout, 1).astype(f32)

    # ---- host-side layout plumbing (one-time, outside the hot kernel):
    #      fold B images into the lane axis; keep channels on sublanes.
    x1g = (x1.reshape(G, B, c1, H, W).transpose(0, 2, 1, 3, 4)
              .reshape(G, c1 * B * H, W))                                     # (G, c1*B*H, W)
    x2g = (x2.reshape(G, B, c2, S).transpose(0, 2, 1, 3)
              .reshape(G, c2, BS))                                            # (G, c2, B*S)

    # Per-tap lane shifts on the flattened (b, i, j) axis; per-image masks
    # zero every tap that would cross an image / frame boundary.
    shifts = [(-((ky - 1) * Wo + (kx - 1))) % BS for ky in range(3) for kx in range(3)]

    def kernel(x1_ref, x2_ref, uxpT_ref, uyb_ref, m_ref, w1_ref, w2_ref,
               b1_ref, b2_ref, o_ref):
        # (1) separable bilinear x2 upsample + F.pad (pad rows are zero rows of
        #     the operators): two small bf16 matmuls, f32 accumulation.
        xw = x1_ref[0].astype(bf16)                                           # (c1*B*H, W)
        t1 = jnp.dot(xw, uxpT_ref[...], preferred_element_type=f32)           # (c1*B*H, Wo)
        t1 = t1.reshape(c1 * B, H, Wo).astype(bf16)
        up = jnp.einsum("bIh,bhw->bIw", uyb_ref[...], t1,
                        preferred_element_type=f32)                           # (c1*B, Ho, Wo)
        up = up.reshape(c1, BS)

        # (2) materialized channel concat, torch.cat([x2, x1], dim=1) order.
        cat = jnp.concatenate([x2_ref[0].astype(f32), up], axis=0)            # (Cin, BS)

        m_all = m_ref[...]                                                    # hoisted once

        def im2col(v):
            # Stack the 9 zero-padded 3x3 taps along the channel axis so the
            # whole conv becomes ONE MXU contraction (K = 9*C).
            cols = []
            for t in range(9):
                if t == 4:                                                    # center tap
                    cols.append(v)
                else:
                    cols.append(pltpu.roll(v, shift=shifts[t], axis=1) * m_all[t])
            return jnp.concatenate(cols, axis=0)                              # (9*C, BS)

        # (3) conv1 + bias + ReLU: single dot, K = 9*Cin.
        col1 = im2col(cat).astype(bf16)
        h1 = jnp.maximum(
            jnp.dot(w1_ref[...], col1, preferred_element_type=f32) + b1_ref[...], 0.0)

        # (4) conv2 + bias + ReLU: single dot, K = 9*Cout.
        col2 = im2col(h1).astype(bf16)
        h2 = jnp.maximum(
            jnp.dot(w2_ref[...], col2, preferred_element_type=f32) + b2_ref[...], 0.0)

        # (5) lane-dense store (last dim B*Ho*Wo, multiple of 128).
        o_ref[0] = h2.astype(o_ref.dtype)

    const_shapes = [
        (W, Wo),                # uxpT
        (c1 * B, Ho, H),        # uyb
        (9, 1, BS),             # masks
        (Cout, 9 * Cin),        # w1m
        (Cout, 9 * Cout),       # w2m
        (Cout, 1),              # b1
        (Cout, 1),              # b2
    ]

    def build_call(single_buffer_consts):
        def const_spec(shape):
            idx = lambda g: (0,) * len(shape)
            if single_buffer_consts:
                # Grid-invariant operands: no need for double buffering.
                return pl.BlockSpec(shape, idx, pipeline_mode=pl.Buffered(1))
            return pl.BlockSpec(shape, idx)

        in_specs = [
            pl.BlockSpec((1, c1 * B * H, W), lambda g: (g, 0, 0)),            # x1 block
            pl.BlockSpec((1, c2, BS), lambda g: (g, 0, 0)),                   # x2 block
        ] + [const_spec(s) for s in const_shapes]

        return pl.pallas_call(
            kernel,
            out_shape=jax.ShapeDtypeStruct((G, Cout, BS), x1.dtype),
            grid=(G,),
            in_specs=in_specs,
            out_specs=pl.BlockSpec((1, Cout, BS), lambda g: (g, 0, 0)),
            compiler_params=pltpu.CompilerParams(
                dimension_semantics=("parallel",),       # batch across v7x's 2 TCs
                vmem_limit_bytes=_vmem_limit_bytes(),
            ),
        )

    args = (x1g, x2g, uxpT, uyb, masks, w1m, w2m, b1c, b2c)
    try:
        out_flat = build_call(True)(*args)
    except Exception:
        # Fallback if this jax build rejects pipeline_mode on top-level
        # BlockSpecs: default double buffering (constants are small anyway).
        out_flat = build_call(False)(*args)

    # Undo the lane-folding layout (cheap host-side plumbing).
    out = (out_flat.reshape(G, Cout, B, S).transpose(0, 2, 1, 3)
                    .reshape(N, Cout, Ho, Wo))
    return out


# ---------------------------------------------------------------------------
# Pure-JAX reference (for correctness check)
# ---------------------------------------------------------------------------
def up_forward_ref(params, x1, x2):
    N, C, H, W = x1.shape
    uy = jnp.asarray(_bilinear_matrix_np(H, 2 * H))
    ux = jnp.asarray(_bilinear_matrix_np(W, 2 * W))
    x1u = jnp.einsum("Hh,nchw,Ww->ncHW", uy, x1, ux)
    diffY = x2.shape[2] - x1u.shape[2]
    diffX = x2.shape[3] - x1u.shape[3]
    x1u = jnp.pad(
        x1u,
        ((0, 0), (0, 0),
         (diffY // 2, diffY - diffY // 2),
         (diffX // 2, diffX - diffX // 2)),
    )
    x = jnp.concatenate([x2, x1u], axis=1)

    def conv(x, w, b):
        y = lax.conv_general_dilated(
            x, w, window_strides=(1, 1), padding=((1, 1), (1, 1)),
            dimension_numbers=("NCHW", "OIHW", "NCHW"))
        return jnp.maximum(y + b[None, :, None, None], 0.0)

    h = conv(x, params["w1"], params["b1"])
    h = conv(h, params["w2"], params["b2"])
    return h


# ---------------------------------------------------------------------------
# Main
# ---------------------------------------------------------------------------
if __name__ == "__main__":
    # Module config: Up(in_channels=8, out_channels=4, bilinear=True)
    in_channels, out_channels = 8, 4
    N, H, W = 2, 8, 8                     # x1 spatial; x2 (skip) is 2x larger

    key = jax.random.PRNGKey(0)
    k1, k2, k3, k4, k5, k6 = jax.random.split(key, 6)

    params = {
        "w1": 0.1 * jax.random.normal(k1, (out_channels, in_channels, 3, 3), jnp.float32),
        "b1": 0.05 * jax.random.normal(k2, (out_channels,), jnp.float32),
        "w2": 0.1 * jax.random.normal(k3, (out_channels, out_channels, 3, 3), jnp.float32),
        "b2": 0.05 * jax.random.normal(k4, (out_channels,), jnp.float32),
    }

    x1 = jax.random.normal(k5, (N, in_channels // 2, H, W), jnp.float32)
    x2 = jax.random.normal(k6, (N, in_channels // 2, 2 * H, 2 * W), jnp.float32)

    out = jax.block_until_ready(up_forward(params, x1, x2))
    ref = jax.block_until_ready(up_forward_ref(params, x1, x2))

    assert out.shape == (N, out_channels, 2 * H, 2 * W), out.shape
    # bf16 matmul operands (f32 accumulation) -> loosened tolerance.
    np.testing.assert_allclose(np.asarray(out), np.asarray(ref), rtol=2e-2, atol=2e-2)
    print("KERNEL_OK")
</pallas_src>

<mosaic_0001>
module attributes {stable_mosaic.version = 11 : i64} {
  func.func @kernel(%arg0: i32, %arg1: memref<1x32x8xf32, #tpu.memory_space<vmem>>, %arg2: memref<1x4x256xf32, #tpu.memory_space<vmem>>, %arg3: memref<8x16xbf16, #tpu.memory_space<vmem>>, %arg4: memref<4x16x8xbf16, #tpu.memory_space<vmem>>, %arg5: memref<9x1x256xf32, #tpu.memory_space<vmem>>, %arg6: memref<4x72xbf16, #tpu.memory_space<vmem>>, %arg7: memref<4x36xbf16, #tpu.memory_space<vmem>>, %arg8: memref<4x1xf32, #tpu.memory_space<vmem>>, %arg9: memref<4x1xf32, #tpu.memory_space<vmem>>, %arg10: memref<1x4x256xf32, #tpu.memory_space<vmem>>) attributes {dimension_semantics = [#tpu.dimension_semantics<parallel>], iteration_bounds = array<i64: 2>, scalar_prefetch = 0 : i64, scratch_operands = 0 : i64, tpu.core_type = #tpu.core_type<tc>, window_params = [{transform_indices = @transform_0, window_bounds = array<i64: 1, 32, 8>}, {transform_indices = @transform_1, window_bounds = array<i64: 1, 4, 256>}, {pipeline_mode = #tpu.pipeline_mode<synchronous>, transform_indices = @transform_2, window_bounds = array<i64: 8, 16>}, {pipeline_mode = #tpu.pipeline_mode<synchronous>, transform_indices = @transform_3, window_bounds = array<i64: 4, 16, 8>}, {pipeline_mode = #tpu.pipeline_mode<synchronous>, transform_indices = @transform_4, window_bounds = array<i64: 9, 1, 256>}, {pipeline_mode = #tpu.pipeline_mode<synchronous>, transform_indices = @transform_5, window_bounds = array<i64: 4, 72>}, {pipeline_mode = #tpu.pipeline_mode<synchronous>, transform_indices = @transform_6, window_bounds = array<i64: 4, 36>}, {pipeline_mode = #tpu.pipeline_mode<synchronous>, transform_indices = @transform_7, window_bounds = array<i64: 4, 1>}, {pipeline_mode = #tpu.pipeline_mode<synchronous>, transform_indices = @transform_8, window_bounds = array<i64: 4, 1>}, {transform_indices = @transform_9, window_bounds = array<i64: 1, 4, 256>}]} {
    %c0 = arith.constant 0 : index
    %c0_0 = arith.constant 0 : index
    %c0_1 = arith.constant 0 : index
    %0 = vector.load %arg1[%c0, %c0_0, %c0_1] : memref<1x32x8xf32, #tpu.memory_space<vmem>>, vector<1x32x8xf32>
    %1 = vector.shape_cast %0 : vector<1x32x8xf32> to vector<32x8xf32>
    %2 = arith.truncf %1 : vector<32x8xf32> to vector<32x8xbf16>
    %c0_2 = arith.constant 0 : index
    %c0_3 = arith.constant 0 : index
    %3 = vector.load %arg3[%c0_2, %c0_3] : memref<8x16xbf16, #tpu.memory_space<vmem>>, vector<8x16xbf16>
    %cst = arith.constant dense<0.000000e+00> : vector<32x16xf32>
    %4 = tpu.matmul %2, %3, %cst {dimension_numbers = #tpu.dot_dimension_numbers<[1], [0], [0], [1], [0, 0, 1, 1], [], []>} : vector<32x8xbf16>, vector<8x16xbf16>, vector<32x16xf32> -> vector<32x16xf32>
    %5 = vector.shape_cast %4 : vector<32x16xf32> to vector<4x8x16xf32>
    %6 = arith.truncf %5 : vector<4x8x16xf32> to vector<4x8x16xbf16>
    %c0_4 = arith.constant 0 : index
    %c0_5 = arith.constant 0 : index
    %c0_6 = arith.constant 0 : index
    %7 = vector.load %arg4[%c0_4, %c0_5, %c0_6] : memref<4x16x8xbf16, #tpu.memory_space<vmem>>, vector<4x16x8xbf16>
    "tpu.trace_start"() <{level = 10 : i32, message = "bIh,bhw->bIw"}> : () -> ()
    %cst_7 = arith.constant dense<0.000000e+00> : vector<4x16x16xf32>
    %8 = tpu.matmul %7, %6, %cst_7 {dimension_numbers = #tpu.dot_dimension_numbers<[2], [1], [1], [2], [0, 0, 0, 1, 1, 2], [0], [0]>} : vector<4x16x8xbf16>, vector<4x8x16xbf16>, vector<4x16x16xf32> -> vector<4x16x16xf32>
    "tpu.trace_stop"() : () -> ()
    %9 = vector.shape_cast %8 : vector<4x16x16xf32> to vector<4x256xf32>
    %c0_8 = arith.constant 0 : index
    %c0_9 = arith.constant 0 : index
    %c0_10 = arith.constant 0 : index
    %10 = vector.load %arg2[%c0_8, %c0_9, %c0_10] : memref<1x4x256xf32, #tpu.memory_space<vmem>>, vector<1x4x256xf32>
    %11 = vector.shape_cast %10 : vector<1x4x256xf32> to vector<4x256xf32>
    %12 = tpu.concatenate %11, %9 in 0 : vector<4x256xf32>, vector<4x256xf32> -> vector<8x256xf32>
    %c0_11 = arith.constant 0 : index
    %c0_12 = arith.constant 0 : index
    %c0_13 = arith.constant 0 : index
    %13 = vector.load %arg5[%c0_11, %c0_12, %c0_13] : memref<9x1x256xf32, #tpu.memory_space<vmem>>, vector<9x1x256xf32>
    %c17_i32 = arith.constant 17 : i32
    %14 = tpu.dynamic_rotate %12 by %c17_i32 dim 1 : vector<8x256xf32>, i32 -> vector<8x256xf32>
    %15 = vector.extract_strided_slice %13 {offsets = [0, 0, 0], sizes = [1, 1, 256], strides = [1, 1, 1]} : vector<9x1x256xf32> to vector<1x1x256xf32>
    %16 = vector.shape_cast %15 : vector<1x1x256xf32> to vector<1x256xf32>
    %17 = vector.broadcast %16 : vector<1x256xf32> to vector<8x256xf32>
    %18 = arith.mulf %14, %17 : vector<8x256xf32>
    %c16_i32 = arith.constant 16 : i32
    %19 = tpu.dynamic_rotate %12 by %c16_i32 dim 1 : vector<8x256xf32>, i32 -> vector<8x256xf32>
    %20 = vector.extract_strided_slice %13 {offsets = [1, 0, 0], sizes = [1, 1, 256], strides = [1, 1, 1]} : vector<9x1x256xf32> to vector<1x1x256xf32>
    %21 = vector.shape_cast %20 : vector<1x1x256xf32> to vector<1x256xf32>
    %22 = vector.broadcast %21 : vector<1x256xf32> to vector<8x256xf32>
    %23 = arith.mulf %19, %22 : vector<8x256xf32>
    %c15_i32 = arith.constant 15 : i32
    %24 = tpu.dynamic_rotate %12 by %c15_i32 dim 1 : vector<8x256xf32>, i32 -> vector<8x256xf32>
    %25 = vector.extract_strided_slice %13 {offsets = [2, 0, 0], sizes = [1, 1, 256], strides = [1, 1, 1]} : vector<9x1x256xf32> to vector<1x1x256xf32>
    %26 = vector.shape_cast %25 : vector<1x1x256xf32> to vector<1x256xf32>
    %27 = vector.broadcast %26 : vector<1x256xf32> to vector<8x256xf32>
    %28 = arith.mulf %24, %27 : vector<8x256xf32>
    %c1_i32 = arith.constant 1 : i32
    %29 = tpu.dynamic_rotate %12 by %c1_i32 dim 1 : vector<8x256xf32>, i32 -> vector<8x256xf32>
    %30 = vector.extract_strided_slice %13 {offsets = [3, 0, 0], sizes = [1, 1, 256], strides = [1, 1, 1]} : vector<9x1x256xf32> to vector<1x1x256xf32>
    %31 = vector.shape_cast %30 : vector<1x1x256xf32> to vector<1x256xf32>
    %32 = vector.broadcast %31 : vector<1x256xf32> to vector<8x256xf32>
    %33 = arith.mulf %29, %32 : vector<8x256xf32>
    %c255_i32 = arith.constant 255 : i32
    %34 = tpu.dynamic_rotate %12 by %c255_i32 dim 1 : vector<8x256xf32>, i32 -> vector<8x256xf32>
    %35 = vector.extract_strided_slice %13 {offsets = [5, 0, 0], sizes = [1, 1, 256], strides = [1, 1, 1]} : vector<9x1x256xf32> to vector<1x1x256xf32>
    %36 = vector.shape_cast %35 : vector<1x1x256xf32> to vector<1x256xf32>
    %37 = vector.broadcast %36 : vector<1x256xf32> to vector<8x256xf32>
    %38 = arith.mulf %34, %37 : vector<8x256xf32>
    %c241_i32 = arith.constant 241 : i32
    %39 = tpu.dynamic_rotate %12 by %c241_i32 dim 1 : vector<8x256xf32>, i32 -> vector<8x256xf32>
    %40 = vector.extract_strided_slice %13 {offsets = [6, 0, 0], sizes = [1, 1, 256], strides = [1, 1, 1]} : vector<9x1x256xf32> to vector<1x1x256xf32>
    %41 = vector.shape_cast %40 : vector<1x1x256xf32> to vector<1x256xf32>
    %42 = vector.broadcast %41 : vector<1x256xf32> to vector<8x256xf32>
    %43 = arith.mulf %39, %42 : vector<8x256xf32>
    %c240_i32 = arith.constant 240 : i32
    %44 = tpu.dynamic_rotate %12 by %c240_i32 dim 1 : vector<8x256xf32>, i32 -> vector<8x256xf32>
    %45 = vector.extract_strided_slice %13 {offsets = [7, 0, 0], sizes = [1, 1, 256], strides = [1, 1, 1]} : vector<9x1x256xf32> to vector<1x1x256xf32>
    %46 = vector.shape_cast %45 : vector<1x1x256xf32> to vector<1x256xf32>
    %47 = vector.broadcast %46 : vector<1x256xf32> to vector<8x256xf32>
    %48 = arith.mulf %44, %47 : vector<8x256xf32>
    %c239_i32 = arith.constant 239 : i32
    %49 = tpu.dynamic_rotate %12 by %c239_i32 dim 1 : vector<8x256xf32>, i32 -> vector<8x256xf32>
    %50 = vector.extract_strided_slice %13 {offsets = [8, 0, 0], sizes = [1, 1, 256], strides = [1, 1, 1]} : vector<9x1x256xf32> to vector<1x1x256xf32>
    %51 = vector.shape_cast %50 : vector<1x1x256xf32> to vector<1x256xf32>
    %52 = vector.broadcast %51 : vector<1x256xf32> to vector<8x256xf32>
    %53 = arith.mulf %49, %52 : vector<8x256xf32>
    %54 = tpu.concatenate %18, %23, %28, %33, %12, %38, %43, %48, %53 in 0 : vector<8x256xf32>, vector<8x256xf32>, vector<8x256xf32>, vector<8x256xf32>, vector<8x256xf32>, vector<8x256xf32>, vector<8x256xf32>, vector<8x256xf32>, vector<8x256xf32> -> vector<72x256xf32>
    %55 = arith.truncf %54 : vector<72x256xf32> to vector<72x256xbf16>
    %c0_14 = arith.constant 0 : index
    %c0_15 = arith.constant 0 : index
    %56 = vector.load %arg6[%c0_14, %c0_15] : memref<4x72xbf16, #tpu.memory_space<vmem>>, vector<4x72xbf16>
    %cst_16 = arith.constant dense<0.000000e+00> : vector<4x256xf32>
    %57 = tpu.matmul %56, %55, %cst_16 {dimension_numbers = #tpu.dot_dimension_numbers<[1], [0], [0], [1], [0, 0, 1, 1], [], []>} : vector<4x72xbf16>, vector<72x256xbf16>, vector<4x256xf32> -> vector<4x256xf32>
    %c0_17 = arith.constant 0 : index
    %c0_18 = arith.constant 0 : index
    %58 = vector.load %arg8[%c0_17, %c0_18] : memref<4x1xf32, #tpu.memory_space<vmem>>, vector<4x1xf32>
    %59 = vector.broadcast %58 : vector<4x1xf32> to vector<4x256xf32>
    %60 = arith.addf %57, %59 : vector<4x256xf32>
    %cst_19 = arith.constant 0.000000e+00 : f32
    %61 = vector.broadcast %cst_19 : f32 to vector<4x256xf32>
    %62 = arith.maximumf %60, %61 : vector<4x256xf32>
    %c17_i32_20 = arith.constant 17 : i32
    %63 = tpu.dynamic_rotate %62 by %c17_i32_20 dim 1 : vector<4x256xf32>, i32 -> vector<4x256xf32>
    %64 = vector.extract_strided_slice %13 {offsets = [0, 0, 0], sizes = [1, 1, 256], strides = [1, 1, 1]} : vector<9x1x256xf32> to vector<1x1x256xf32>
    %65 = vector.shape_cast %64 : vector<1x1x256xf32> to vector<1x256xf32>
    %66 = vector.broadcast %65 : vector<1x256xf32> to vector<4x256xf32>
    %67 = arith.mulf %63, %66 : vector<4x256xf32>
    %c16_i32_21 = arith.constant 16 : i32
    %68 = tpu.dynamic_rotate %62 by %c16_i32_21 dim 1 : vector<4x256xf32>, i32 -> vector<4x256xf32>
    %69 = vector.extract_strided_slice %13 {offsets = [1, 0, 0], sizes = [1, 1, 256], strides = [1, 1, 1]} : vector<9x1x256xf32> to vector<1x1x256xf32>
    %70 = vector.shape_cast %69 : vector<1x1x256xf32> to vector<1x256xf32>
    %71 = vector.broadcast %70 : vector<1x256xf32> to vector<4x256xf32>
    %72 = arith.mulf %68, %71 : vector<4x256xf32>
    %c15_i32_22 = arith.constant 15 : i32
    %73 = tpu.dynamic_rotate %62 by %c15_i32_22 dim 1 : vector<4x256xf32>, i32 -> vector<4x256xf32>
    %74 = vector.extract_strided_slice %13 {offsets = [2, 0, 0], sizes = [1, 1, 256], strides = [1, 1, 1]} : vector<9x1x256xf32> to vector<1x1x256xf32>
    %75 = vector.shape_cast %74 : vector<1x1x256xf32> to vector<1x256xf32>
    %76 = vector.broadcast %75 : vector<1x256xf32> to vector<4x256xf32>
    %77 = arith.mulf %73, %76 : vector<4x256xf32>
    %c1_i32_23 = arith.constant 1 : i32
    %78 = tpu.dynamic_rotate %62 by %c1_i32_23 dim 1 : vector<4x256xf32>, i32 -> vector<4x256xf32>
    %79 = vector.extract_strided_slice %13 {offsets = [3, 0, 0], sizes = [1, 1, 256], strides = [1, 1, 1]} : vector<9x1x256xf32> to vector<1x1x256xf32>
    %80 = vector.shape_cast %79 : vector<1x1x256xf32> to vector<1x256xf32>
    %81 = vector.broadcast %80 : vector<1x256xf32> to vector<4x256xf32>
    %82 = arith.mulf %78, %81 : vector<4x256xf32>
    %c255_i32_24 = arith.constant 255 : i32
    %83 = tpu.dynamic_rotate %62 by %c255_i32_24 dim 1 : vector<4x256xf32>, i32 -> vector<4x256xf32>
    %84 = vector.extract_strided_slice %13 {offsets = [5, 0, 0], sizes = [1, 1, 256], strides = [1, 1, 1]} : vector<9x1x256xf32> to vector<1x1x256xf32>
    %85 = vector.shape_cast %84 : vector<1x1x256xf32> to vector<1x256xf32>
    %86 = vector.broadcast %85 : vector<1x256xf32> to vector<4x256xf32>
    %87 = arith.mulf %83, %86 : vector<4x256xf32>
    %c241_i32_25 = arith.constant 241 : i32
    %88 = tpu.dynamic_rotate %62 by %c241_i32_25 dim 1 : vector<4x256xf32>, i32 -> vector<4x256xf32>
    %89 = vector.extract_strided_slice %13 {offsets = [6, 0, 0], sizes = [1, 1, 256], strides = [1, 1, 1]} : vector<9x1x256xf32> to vector<1x1x256xf32>
    %90 = vector.shape_cast %89 : vector<1x1x256xf32> to vector<1x256xf32>
    %91 = vector.broadcast %90 : vector<1x256xf32> to vector<4x256xf32>
    %92 = arith.mulf %88, %91 : vector<4x256xf32>
    %c240_i32_26 = arith.constant 240 : i32
    %93 = tpu.dynamic_rotate %62 by %c240_i32_26 dim 1 : vector<4x256xf32>, i32 -> vector<4x256xf32>
    %94 = vector.extract_strided_slice %13 {offsets = [7, 0, 0], sizes = [1, 1, 256], strides = [1, 1, 1]} : vector<9x1x256xf32> to vector<1x1x256xf32>
    %95 = vector.shape_cast %94 : vector<1x1x256xf32> to vector<1x256xf32>
    %96 = vector.broadcast %95 : vector<1x256xf32> to vector<4x256xf32>
    %97 = arith.mulf %93, %96 : vector<4x256xf32>
    %c239_i32_27 = arith.constant 239 : i32
    %98 = tpu.dynamic_rotate %62 by %c239_i32_27 dim 1 : vector<4x256xf32>, i32 -> vector<4x256xf32>
    %99 = vector.extract_strided_slice %13 {offsets = [8, 0, 0], sizes = [1, 1, 256], strides = [1, 1, 1]} : vector<9x1x256xf32> to vector<1x1x256xf32>
    %100 = vector.shape_cast %99 : vector<1x1x256xf32> to vector<1x256xf32>
    %101 = vector.broadcast %100 : vector<1x256xf32> to vector<4x256xf32>
    %102 = arith.mulf %98, %101 : vector<4x256xf32>
    %103 = tpu.concatenate %67, %72, %77, %82, %62, %87, %92, %97, %102 in 0 : vector<4x256xf32>, vector<4x256xf32>, vector<4x256xf32>, vector<4x256xf32>, vector<4x256xf32>, vector<4x256xf32>, vector<4x256xf32>, vector<4x256xf32>, vector<4x256xf32> -> vector<36x256xf32>
    %104 = arith.truncf %103 : vector<36x256xf32> to vector<36x256xbf16>
    %c0_28 = arith.constant 0 : index
    %c0_29 = arith.constant 0 : index
    %105 = vector.load %arg7[%c0_28, %c0_29] : memref<4x36xbf16, #tpu.memory_space<vmem>>, vector<4x36xbf16>
    %cst_30 = arith.constant dense<0.000000e+00> : vector<4x256xf32>
    %106 = tpu.matmul %105, %104, %cst_30 {dimension_numbers = #tpu.dot_dimension_numbers<[1], [0], [0], [1], [0, 0, 1, 1], [], []>} : vector<4x36xbf16>, vector<36x256xbf16>, vector<4x256xf32> -> vector<4x256xf32>
    %c0_31 = arith.constant 0 : index
    %c0_32 = arith.constant 0 : index
    %107 = vector.load %arg9[%c0_31, %c0_32] : memref<4x1xf32, #tpu.memory_space<vmem>>, vector<4x1xf32>
    %108 = vector.broadcast %107 : vector<4x1xf32> to vector<4x256xf32>
    %109 = arith.addf %106, %108 : vector<4x256xf32>
    %cst_33 = arith.constant 0.000000e+00 : f32
    %110 = vector.broadcast %cst_33 : f32 to vector<4x256xf32>
    %111 = arith.maximumf %109, %110 : vector<4x256xf32>
    %c0_34 = arith.constant 0 : index
    %c0_35 = arith.constant 0 : index
    %c0_36 = arith.constant 0 : index
    %112 = vector.load %arg10[%c0_34, %c0_35, %c0_36] : memref<1x4x256xf32, #tpu.memory_space<vmem>>, vector<1x4x256xf32>
    %113 = vector.shape_cast %112 : vector<1x4x256xf32> to vector<4x256xf32>
    %114 = vector.shape_cast %111 : vector<4x256xf32> to vector<1x4x256xf32>
    tpu.vector_store %arg10[%c0_34, %c0_35, %c0_36], %114 {strides = array<i32>} : memref<1x4x256xf32, #tpu.memory_space<vmem>>, vector<1x4x256xf32>,
    return
  }
  func.func @transform_0(%arg0: i32) -> (i32, i32, i32) {
    %c0_i32 = arith.constant 0 : i32
    %c0_i32_0 = arith.constant 0 : i32
    %c0_i32_1 = arith.constant 0 : i32
    return %arg0, %c0_i32, %c0_i32_0 : i32, i32, i32
  }
  func.func @transform_1(%arg0: i32) -> (i32, i32, i32) {
    %c0_i32 = arith.constant 0 : i32
    %c0_i32_0 = arith.constant 0 : i32
    %c0_i32_1 = arith.constant 0 : i32
    return %arg0, %c0_i32, %c0_i32_0 : i32, i32, i32
  }
  func.func @transform_2(%arg0: i32) -> (i32, i32) {
    %c0_i32 = arith.constant 0 : i32
    %c0_i32_0 = arith.constant 0 : i32
    %c0_i32_1 = arith.constant 0 : i32
    return %c0_i32, %c0_i32_0 : i32, i32
  }
  func.func @transform_3(%arg0: i32) -> (i32, i32, i32) {
    %c0_i32 = arith.constant 0 : i32
    %c0_i32_0 = arith.constant 0 : i32
    %c0_i32_1 = arith.constant 0 : i32
    %c0_i32_2 = arith.constant 0 : i32
    return %c0_i32, %c0_i32_0, %c0_i32_1 : i32, i32, i32
  }
  func.func @transform_4(%arg0: i32) -> (i32, i32, i32) {
    %c0_i32 = arith.constant 0 : i32
    %c0_i32_0 = arith.constant 0 : i32
    %c0_i32_1 = arith.constant 0 : i32
    %c0_i32_2 = arith.constant 0 : i32
    return %c0_i32, %c0_i32_0, %c0_i32_1 : i32, i32, i32
  }
  func.func @transform_5(%arg0: i32) -> (i32, i32) {
    %c0_i32 = arith.constant 0 : i32
    %c0_i32_0 = arith.constant 0 : i32
    %c0_i32_1 = arith.constant 0 : i32
    return %c0_i32, %c0_i32_0 : i32, i32
  }
  func.func @transform_6(%arg0: i32) -> (i32, i32) {
    %c0_i32 = arith.constant 0 : i32
    %c0_i32_0 = arith.constant 0 : i32
    %c0_i32_1 = arith.constant 0 : i32
    return %c0_i32, %c0_i32_0 : i32, i32
  }
  func.func @transform_7(%arg0: i32) -> (i32, i32) {
    %c0_i32 = arith.constant 0 : i32
    %c0_i32_0 = arith.constant 0 : i32
    %c0_i32_1 = arith.constant 0 : i32
    return %c0_i32, %c0_i32_0 : i32, i32
  }
  func.func @transform_8(%arg0: i32) -> (i32, i32) {
    %c0_i32 = arith.constant 0 : i32
    %c0_i32_0 = arith.constant 0 : i32
    %c0_i32_1 = arith.constant 0 : i32
    return %c0_i32, %c0_i32_0 : i32, i32
  }
  func.func @transform_9(%arg0: i32) -> (i32, i32, i32) {
    %c0_i32 = arith.constant 0 : i32
    %c0_i32_0 = arith.constant 0 : i32
    %c0_i32_1 = arith.constant 0 : i32
    return %arg0, %c0_i32, %c0_i32_0 : i32, i32, i32
  }
}

module attributes {stable_mosaic.version = 11 : i64} {
  func.func @kernel(%arg0: i32, %arg1: memref<1x32x8xf32, #tpu.memory_space<vmem>>, %arg2: memref<1x4x256xf32, #tpu.memory_space<vmem>>, %arg3: memref<8x16xbf16, #tpu.memory_space<vmem>>, %arg4: memref<4x16x8xbf16, #tpu.memory_space<vmem>>, %arg5: memref<9x1x256xf32, #tpu.memory_space<vmem>>, %arg6: memref<4x72xbf16, #tpu.memory_space<vmem>>, %arg7: memref<4x36xbf16, #tpu.memory_space<vmem>>, %arg8: memref<4x1xf32, #tpu.memory_space<vmem>>, %arg9: memref<4x1xf32, #tpu.memory_space<vmem>>, %arg10: memref<1x4x256xf32, #tpu.memory_space<vmem>>) attributes {dimension_semantics = [#tpu.dimension_semantics<parallel>], iteration_bounds = array<i64: 2>, scalar_prefetch = 0 : i64, scratch_operands = 0 : i64, tpu.core_type = #tpu.core_type<tc>, window_params = [{transform_indices = @transform_0, window_bounds = array<i64: 1, 32, 8>}, {transform_indices = @transform_1, window_bounds = array<i64: 1, 4, 256>}, {pipeline_mode = #tpu.pipeline_mode<synchronous>, transform_indices = @transform_2, window_bounds = array<i64: 8, 16>}, {pipeline_mode = #tpu.pipeline_mode<synchronous>, transform_indices = @transform_3, window_bounds = array<i64: 4, 16, 8>}, {pipeline_mode = #tpu.pipeline_mode<synchronous>, transform_indices = @transform_4, window_bounds = array<i64: 9, 1, 256>}, {pipeline_mode = #tpu.pipeline_mode<synchronous>, transform_indices = @transform_5, window_bounds = array<i64: 4, 72>}, {pipeline_mode = #tpu.pipeline_mode<synchronous>, transform_indices = @transform_6, window_bounds = array<i64: 4, 36>}, {pipeline_mode = #tpu.pipeline_mode<synchronous>, transform_indices = @transform_7, window_bounds = array<i64: 4, 1>}, {pipeline_mode = #tpu.pipeline_mode<synchronous>, transform_indices = @transform_8, window_bounds = array<i64: 4, 1>}, {transform_indices = @transform_9, window_bounds = array<i64: 1, 4, 256>}]} {
    %c0 = arith.constant 0 : index
    %c0_0 = arith.constant 0 : index
    %c0_1 = arith.constant 0 : index
    %0 = vector.load %arg1[%c0, %c0_0, %c0_1] : memref<1x32x8xf32, #tpu.memory_space<vmem>>, vector<1x32x8xf32>
    %1 = vector.shape_cast %0 : vector<1x32x8xf32> to vector<32x8xf32>
    %2 = arith.truncf %1 : vector<32x8xf32> to vector<32x8xbf16>
    %c0_2 = arith.constant 0 : index
    %c0_3 = arith.constant 0 : index
    %3 = vector.load %arg3[%c0_2, %c0_3] : memref<8x16xbf16, #tpu.memory_space<vmem>>, vector<8x16xbf16>
    %cst = arith.constant dense<0.000000e+00> : vector<32x16xf32>
    %4 = tpu.matmul %2, %3, %cst {dimension_numbers = #tpu.dot_dimension_numbers<[1], [0], [0], [1], [0, 0, 1, 1], [], []>} : vector<32x8xbf16>, vector<8x16xbf16>, vector<32x16xf32> -> vector<32x16xf32>
    %5 = vector.shape_cast %4 : vector<32x16xf32> to vector<4x8x16xf32>
    %6 = arith.truncf %5 : vector<4x8x16xf32> to vector<4x8x16xbf16>
    %c0_4 = arith.constant 0 : index
    %c0_5 = arith.constant 0 : index
    %c0_6 = arith.constant 0 : index
    %7 = vector.load %arg4[%c0_4, %c0_5, %c0_6] : memref<4x16x8xbf16, #tpu.memory_space<vmem>>, vector<4x16x8xbf16>
    "tpu.trace_start"() <{level = 10 : i32, message = "bIh,bhw->bIw"}> : () -> ()
    %cst_7 = arith.constant dense<0.000000e+00> : vector<4x16x16xf32>
    %8 = tpu.matmul %7, %6, %cst_7 {dimension_numbers = #tpu.dot_dimension_numbers<[2], [1], [1], [2], [0, 0, 0, 1, 1, 2], [0], [0]>} : vector<4x16x8xbf16>, vector<4x8x16xbf16>, vector<4x16x16xf32> -> vector<4x16x16xf32>
    "tpu.trace_stop"() : () -> ()
    %9 = vector.shape_cast %8 : vector<4x16x16xf32> to vector<4x256xf32>
    %c0_8 = arith.constant 0 : index
    %c0_9 = arith.constant 0 : index
    %c0_10 = arith.constant 0 : index
    %10 = vector.load %arg2[%c0_8, %c0_9, %c0_10] : memref<1x4x256xf32, #tpu.memory_space<vmem>>, vector<1x4x256xf32>
    %11 = vector.shape_cast %10 : vector<1x4x256xf32> to vector<4x256xf32>
    %12 = tpu.concatenate %11, %9 in 0 : vector<4x256xf32>, vector<4x256xf32> -> vector<8x256xf32>
    %c0_11 = arith.constant 0 : index
    %c0_12 = arith.constant 0 : index
    %c0_13 = arith.constant 0 : index
    %13 = vector.load %arg5[%c0_11, %c0_12, %c0_13] : memref<9x1x256xf32, #tpu.memory_space<vmem>>, vector<9x1x256xf32>
    %c17_i32 = arith.constant 17 : i32
    %14 = tpu.dynamic_rotate %12 by %c17_i32 dim 1 : vector<8x256xf32>, i32 -> vector<8x256xf32>
    %15 = vector.extract_strided_slice %13 {offsets = [0, 0, 0], sizes = [1, 1, 256], strides = [1, 1, 1]} : vector<9x1x256xf32> to vector<1x1x256xf32>
    %16 = vector.shape_cast %15 : vector<1x1x256xf32> to vector<1x256xf32>
    %17 = vector.broadcast %16 : vector<1x256xf32> to vector<8x256xf32>
    %18 = arith.mulf %14, %17 : vector<8x256xf32>
    %c16_i32 = arith.constant 16 : i32
    %19 = tpu.dynamic_rotate %12 by %c16_i32 dim 1 : vector<8x256xf32>, i32 -> vector<8x256xf32>
    %20 = vector.extract_strided_slice %13 {offsets = [1, 0, 0], sizes = [1, 1, 256], strides = [1, 1, 1]} : vector<9x1x256xf32> to vector<1x1x256xf32>
    %21 = vector.shape_cast %20 : vector<1x1x256xf32> to vector<1x256xf32>
    %22 = vector.broadcast %21 : vector<1x256xf32> to vector<8x256xf32>
    %23 = arith.mulf %19, %22 : vector<8x256xf32>
    %c15_i32 = arith.constant 15 : i32
    %24 = tpu.dynamic_rotate %12 by %c15_i32 dim 1 : vector<8x256xf32>, i32 -> vector<8x256xf32>
    %25 = vector.extract_strided_slice %13 {offsets = [2, 0, 0], sizes = [1, 1, 256], strides = [1, 1, 1]} : vector<9x1x256xf32> to vector<1x1x256xf32>
    %26 = vector.shape_cast %25 : vector<1x1x256xf32> to vector<1x256xf32>
    %27 = vector.broadcast %26 : vector<1x256xf32> to vector<8x256xf32>
    %28 = arith.mulf %24, %27 : vector<8x256xf32>
    %c1_i32 = arith.constant 1 : i32
    %29 = tpu.dynamic_rotate %12 by %c1_i32 dim 1 : vector<8x256xf32>, i32 -> vector<8x256xf32>
    %30 = vector.extract_strided_slice %13 {offsets = [3, 0, 0], sizes = [1, 1, 256], strides = [1, 1, 1]} : vector<9x1x256xf32> to vector<1x1x256xf32>
    %31 = vector.shape_cast %30 : vector<1x1x256xf32> to vector<1x256xf32>
    %32 = vector.broadcast %31 : vector<1x256xf32> to vector<8x256xf32>
    %33 = arith.mulf %29, %32 : vector<8x256xf32>
    %c255_i32 = arith.constant 255 : i32
    %34 = tpu.dynamic_rotate %12 by %c255_i32 dim 1 : vector<8x256xf32>, i32 -> vector<8x256xf32>
    %35 = vector.extract_strided_slice %13 {offsets = [5, 0, 0], sizes = [1, 1, 256], strides = [1, 1, 1]} : vector<9x1x256xf32> to vector<1x1x256xf32>
    %36 = vector.shape_cast %35 : vector<1x1x256xf32> to vector<1x256xf32>
    %37 = vector.broadcast %36 : vector<1x256xf32> to vector<8x256xf32>
    %38 = arith.mulf %34, %37 : vector<8x256xf32>
    %c241_i32 = arith.constant 241 : i32
    %39 = tpu.dynamic_rotate %12 by %c241_i32 dim 1 : vector<8x256xf32>, i32 -> vector<8x256xf32>
    %40 = vector.extract_strided_slice %13 {offsets = [6, 0, 0], sizes = [1, 1, 256], strides = [1, 1, 1]} : vector<9x1x256xf32> to vector<1x1x256xf32>
    %41 = vector.shape_cast %40 : vector<1x1x256xf32> to vector<1x256xf32>
    %42 = vector.broadcast %41 : vector<1x256xf32> to vector<8x256xf32>
    %43 = arith.mulf %39, %42 : vector<8x256xf32>
    %c240_i32 = arith.constant 240 : i32
    %44 = tpu.dynamic_rotate %12 by %c240_i32 dim 1 : vector<8x256xf32>, i32 -> vector<8x256xf32>
    %45 = vector.extract_strided_slice %13 {offsets = [7, 0, 0], sizes = [1, 1, 256], strides = [1, 1, 1]} : vector<9x1x256xf32> to vector<1x1x256xf32>
    %46 = vector.shape_cast %45 : vector<1x1x256xf32> to vector<1x256xf32>
    %47 = vector.broadcast %46 : vector<1x256xf32> to vector<8x256xf32>
    %48 = arith.mulf %44, %47 : vector<8x256xf32>
    %c239_i32 = arith.constant 239 : i32
    %49 = tpu.dynamic_rotate %12 by %c239_i32 dim 1 : vector<8x256xf32>, i32 -> vector<8x256xf32>
    %50 = vector.extract_strided_slice %13 {offsets = [8, 0, 0], sizes = [1, 1, 256], strides = [1, 1, 1]} : vector<9x1x256xf32> to vector<1x1x256xf32>
    %51 = vector.shape_cast %50 : vector<1x1x256xf32> to vector<1x256xf32>
    %52 = vector.broadcast %51 : vector<1x256xf32> to vector<8x256xf32>
    %53 = arith.mulf %49, %52 : vector<8x256xf32>
    %54 = tpu.concatenate %18, %23, %28, %33, %12, %38, %43, %48, %53 in 0 : vector<8x256xf32>, vector<8x256xf32>, vector<8x256xf32>, vector<8x256xf32>, vector<8x256xf32>, vector<8x256xf32>, vector<8x256xf32>, vector<8x256xf32>, vector<8x256xf32> -> vector<72x256xf32>
    %55 = arith.truncf %54 : vector<72x256xf32> to vector<72x256xbf16>
    %c0_14 = arith.constant 0 : index
    %c0_15 = arith.constant 0 : index
    %56 = vector.load %arg6[%c0_14, %c0_15] : memref<4x72xbf16, #tpu.memory_space<vmem>>, vector<4x72xbf16>
    %cst_16 = arith.constant dense<0.000000e+00> : vector<4x256xf32>
    %57 = tpu.matmul %56, %55, %cst_16 {dimension_numbers = #tpu.dot_dimension_numbers<[1], [0], [0], [1], [0, 0, 1, 1], [], []>} : vector<4x72xbf16>, vector<72x256xbf16>, vector<4x256xf32> -> vector<4x256xf32>
    %c0_17 = arith.constant 0 : index
    %c0_18 = arith.constant 0 : index
    %58 = vector.load %arg8[%c0_17, %c0_18] : memref<4x1xf32, #tpu.memory_space<vmem>>, vector<4x1xf32>
    %59 = vector.broadcast %58 : vector<4x1xf32> to vector<4x256xf32>
    %60 = arith.addf %57, %59 : vector<4x256xf32>
    %cst_19 = arith.constant 0.000000e+00 : f32
    %61 = vector.broadcast %cst_19 : f32 to vector<4x256xf32>
    %62 = arith.maximumf %60, %61 : vector<4x256xf32>
    %c17_i32_20 = arith.constant 17 : i32
    %63 = tpu.dynamic_rotate %62 by %c17_i32_20 dim 1 : vector<4x256xf32>, i32 -> vector<4x256xf32>
    %64 = vector.extract_strided_slice %13 {offsets = [0, 0, 0], sizes = [1, 1, 256], strides = [1, 1, 1]} : vector<9x1x256xf32> to vector<1x1x256xf32>
    %65 = vector.shape_cast %64 : vector<1x1x256xf32> to vector<1x256xf32>
    %66 = vector.broadcast %65 : vector<1x256xf32> to vector<4x256xf32>
    %67 = arith.mulf %63, %66 : vector<4x256xf32>
    %c16_i32_21 = arith.constant 16 : i32
    %68 = tpu.dynamic_rotate %62 by %c16_i32_21 dim 1 : vector<4x256xf32>, i32 -> vector<4x256xf32>
    %69 = vector.extract_strided_slice %13 {offsets = [1, 0, 0], sizes = [1, 1, 256], strides = [1, 1, 1]} : vector<9x1x256xf32> to vector<1x1x256xf32>
    %70 = vector.shape_cast %69 : vector<1x1x256xf32> to vector<1x256xf32>
    %71 = vector.broadcast %70 : vector<1x256xf32> to vector<4x256xf32>
    %72 = arith.mulf %68, %71 : vector<4x256xf32>
    %c15_i32_22 = arith.constant 15 : i32
    %73 = tpu.dynamic_rotate %62 by %c15_i32_22 dim 1 : vector<4x256xf32>, i32 -> vector<4x256xf32>
    %74 = vector.extract_strided_slice %13 {offsets = [2, 0, 0], sizes = [1, 1, 256], strides = [1, 1, 1]} : vector<9x1x256xf32> to vector<1x1x256xf32>
    %75 = vector.shape_cast %74 : vector<1x1x256xf32> to vector<1x256xf32>
    %76 = vector.broadcast %75 : vector<1x256xf32> to vector<4x256xf32>
    %77 = arith.mulf %73, %76 : vector<4x256xf32>
    %c1_i32_23 = arith.constant 1 : i32
    %78 = tpu.dynamic_rotate %62 by %c1_i32_23 dim 1 : vector<4x256xf32>, i32 -> vector<4x256xf32>
    %79 = vector.extract_strided_slice %13 {offsets = [3, 0, 0], sizes = [1, 1, 256], strides = [1, 1, 1]} : vector<9x1x256xf32> to vector<1x1x256xf32>
    %80 = vector.shape_cast %79 : vector<1x1x256xf32> to vector<1x256xf32>
    %81 = vector.broadcast %80 : vector<1x256xf32> to vector<4x256xf32>
    %82 = arith.mulf %78, %81 : vector<4x256xf32>
    %c255_i32_24 = arith.constant 255 : i32
    %83 = tpu.dynamic_rotate %62 by %c255_i32_24 dim 1 : vector<4x256xf32>, i32 -> vector<4x256xf32>
    %84 = vector.extract_strided_slice %13 {offsets = [5, 0, 0], sizes = [1, 1, 256], strides = [1, 1, 1]} : vector<9x1x256xf32> to vector<1x1x256xf32>
    %85 = vector.shape_cast %84 : vector<1x1x256xf32> to vector<1x256xf32>
    %86 = vector.broadcast %85 : vector<1x256xf32> to vector<4x256xf32>
    %87 = arith.mulf %83, %86 : vector<4x256xf32>
    %c241_i32_25 = arith.constant 241 : i32
    %88 = tpu.dynamic_rotate %62 by %c241_i32_25 dim 1 : vector<4x256xf32>, i32 -> vector<4x256xf32>
    %89 = vector.extract_strided_slice %13 {offsets = [6, 0, 0], sizes = [1, 1, 256], strides = [1, 1, 1]} : vector<9x1x256xf32> to vector<1x1x256xf32>
    %90 = vector.shape_cast %89 : vector<1x1x256xf32> to vector<1x256xf32>
    %91 = vector.broadcast %90 : vector<1x256xf32> to vector<4x256xf32>
    %92 = arith.mulf %88, %91 : vector<4x256xf32>
    %c240_i32_26 = arith.constant 240 : i32
    %93 = tpu.dynamic_rotate %62 by %c240_i32_26 dim 1 : vector<4x256xf32>, i32 -> vector<4x256xf32>
    %94 = vector.extract_strided_slice %13 {offsets = [7, 0, 0], sizes = [1, 1, 256], strides = [1, 1, 1]} : vector<9x1x256xf32> to vector<1x1x256xf32>
    %95 = vector.shape_cast %94 : vector<1x1x256xf32> to vector<1x256xf32>
    %96 = vector.broadcast %95 : vector<1x256xf32> to vector<4x256xf32>
    %97 = arith.mulf %93, %96 : vector<4x256xf32>
    %c239_i32_27 = arith.constant 239 : i32
    %98 = tpu.dynamic_rotate %62 by %c239_i32_27 dim 1 : vector<4x256xf32>, i32 -> vector<4x256xf32>
    %99 = vector.extract_strided_slice %13 {offsets = [8, 0, 0], sizes = [1, 1, 256], strides = [1, 1, 1]} : vector<9x1x256xf32> to vector<1x1x256xf32>
    %100 = vector.shape_cast %99 : vector<1x1x256xf32> to vector<1x256xf32>
    %101 = vector.broadcast %100 : vector<1x256xf32> to vector<4x256xf32>
    %102 = arith.mulf %98, %101 : vector<4x256xf32>
    %103 = tpu.concatenate %67, %72, %77, %82, %62, %87, %92, %97, %102 in 0 : vector<4x256xf32>, vector<4x256xf32>, vector<4x256xf32>, vector<4x256xf32>, vector<4x256xf32>, vector<4x256xf32>, vector<4x256xf32>, vector<4x256xf32>, vector<4x256xf32> -> vector<36x256xf32>
    %104 = arith.truncf %103 : vector<36x256xf32> to vector<36x256xbf16>
    %c0_28 = arith.constant 0 : index
    %c0_29 = arith.constant 0 : index
    %105 = vector.load %arg7[%c0_28, %c0_29] : memref<4x36xbf16, #tpu.memory_space<vmem>>, vector<4x36xbf16>
    %cst_30 = arith.constant dense<0.000000e+00> : vector<4x256xf32>
    %106 = tpu.matmul %105, %104, %cst_30 {dimension_numbers = #tpu.dot_dimension_numbers<[1], [0], [0], [1], [0, 0, 1, 1], [], []>} : vector<4x36xbf16>, vector<36x256xbf16>, vector<4x256xf32> -> vector<4x256xf32>
    %c0_31 = arith.constant 0 : index
    %c0_32 = arith.constant 0 : index
    %107 = vector.load %arg9[%c0_31, %c0_32] : memref<4x1xf32, #tpu.memory_space<vmem>>, vector<4x1xf32>
    %108 = vector.broadcast %107 : vector<4x1xf32> to vector<4x256xf32>
    %109 = arith.addf %106, %108 : vector<4x256xf32>
    %cst_33 = arith.constant 0.000000e+00 : f32
    %110 = vector.broadcast %cst_33 : f32 to vector<4x256xf32>
    %111 = arith.maximumf %109, %110 : vector<4x256xf32>
    %c0_34 = arith.constant 0 : index
    %c0_35 = arith.constant 0 : index
    %c0_36 = arith.constant 0 : index
    %112 = vector.load %arg10[%c0_34, %c0_35, %c0_36] : memref<1x4x256xf32, #tpu.memory_space<vmem>>, vector<1x4x256xf32>
    %113 = vector.shape_cast %112 : vector<1x4x256xf32> to vector<4x256xf32>
    %114 = vector.shape_cast %111 : vector<4x256xf32> to vector<1x4x256xf32>
    tpu.vector_store %arg10[%c0_34, %c0_35, %c0_36], %114 {strides = array<i32>} : memref<1x4x256xf32, #tpu.memory_space<vmem>>, vector<1x4x256xf32>,
    return
  }
  func.func @transform_0(%arg0: i32) -> (i32, i32, i32) {
    %c0_i32 = arith.constant 0 : i32
    %c0_i32_0 = arith.constant 0 : i32
    %c0_i32_1 = arith.constant 0 : i32
    return %arg0, %c0_i32, %c0_i32_0 : i32, i32, i32
  }
  func.func @transform_1(%arg0: i32) -> (i32, i32, i32) {
    %c0_i32 = arith.constant 0 : i32
    %c0_i32_0 = arith.constant 0 : i32
    %c0_i32_1 = arith.constant 0 : i32
    return %arg0, %c0_i32, %c0_i32_0 : i32, i32, i32
  }
  func.func @transform_2(%arg0: i32) -> (i32, i32) {
    %c0_i32 = arith.constant 0 : i32
    %c0_i32_0 = arith.constant 0 : i32
    %c0_i32_1 = arith.constant 0 : i32
    return %c0_i32, %c0_i32_0 : i32, i32
  }
  func.func @transform_3(%arg0: i32) -> (i32, i32, i32) {
    %c0_i32 = arith.constant 0 : i32
    %c0_i32_0 = arith.constant 0 : i32
    %c0_i32_1 = arith.constant 0 : i32
    %c0_i32_2 = arith.constant 0 : i32
    return %c0_i32, %c0_i32_0, %c0_i32_1 : i32, i32, i32
  }
  func.func @transform_4(%arg0: i32) -> (i32, i32, i32) {
    %c0_i32 = arith.constant 0 : i32
    %c0_i32_0 = arith.constant 0 : i32
    %c0_i32_1 = arith.constant 0 : i32
    %c0_i32_2 = arith.constant 0 : i32
    return %c0_i32, %c0_i32_0, %c0_i32_1 : i32, i32, i32
  }
  func.func @transform_5(%arg0: i32) -> (i32, i32) {
    %c0_i32 = arith.constant 0 : i32
    %c0_i32_0 = arith.constant 0 : i32
    %c0_i32_1 = arith.constant 0 : i32
    return %c0_i32, %c0_i32_0 : i32, i32
  }
  func.func @transform_6(%arg0: i32) -> (i32, i32) {
    %c0_i32 = arith.constant 0 : i32
    %c0_i32_0 = arith.constant 0 : i32
    %c0_i32_1 = arith.constant 0 : i32
    return %c0_i32, %c0_i32_0 : i32, i32
  }
  func.func @transform_7(%arg0: i32) -> (i32, i32) {
    %c0_i32 = arith.constant 0 : i32
    %c0_i32_0 = arith.constant 0 : i32
    %c0_i32_1 = arith.constant 0 : i32
    return %c0_i32, %c0_i32_0 : i32, i32
  }
  func.func @transform_8(%arg0: i32) -> (i32, i32) {
    %c0_i32 = arith.constant 0 : i32
    %c0_i32_0 = arith.constant 0 : i32
    %c0_i32_1 = arith.constant 0 : i32
    return %c0_i32, %c0_i32_0 : i32, i32
  }
  func.func @transform_9(%arg0: i32) -> (i32, i32, i32) {
    %c0_i32 = arith.constant 0 : i32
    %c0_i32_0 = arith.constant 0 : i32
    %c0_i32_1 = arith.constant 0 : i32
    return %arg0, %c0_i32, %c0_i32_0 : i32, i32, i32
  }
}

</mosaic_0001>

<bundles_post_ra>
// kernel: tpu_custom_call.1
= control target key start
LH: loop header
LB: loop body
LE: loop exit
PB: predicated region body
PF: predicated region fallthrough
CT: control target
= control target key end

     0   :  { %14 = vsyncpa [#allocation3], 0  ;;  %s1799_s0 = inlined_call_operand.vmem [shape: f32[2,32,8], index: 0, kind: input, shape index: {}]   ;;  %s1800_s1 = inlined_call_operand.vmem [shape: f32[2,4,256], index: 1, kind: input, shape index: {}]   ;;  %s1801_s2 = inlined_call_operand.vmem [shape: bf16[8,16], index: 2, kind: input, shape index: {}]   ;;  %s1802_s3 = inlined_call_operand.vmem [shape: bf16[4,16,8], index: 3, kind: input, shape index: {}]   ;;  %s1803_s4 = inlined_call_operand.vmem [shape: f32[9,1,256], index: 4, kind: input, shape index: {}]   ;;  %s1804_s5 = inlined_call_operand.vmem [shape: bf16[4,72], index: 5, kind: input, shape index: {}]   ;;  %s1805_s6 = inlined_call_operand.vmem [shape: bf16[4,36], index: 6, kind: input, shape index: {}]   ;;  %s1806_s7 = inlined_call_operand.vmem [shape: f32[4,1], index: 7, kind: input, shape index: {}]   ;;  %s1807_s8 = inlined_call_operand.vmem [shape: f32[4,1], index: 8, kind: input, shape index: {}]   ;;  %s1808_s9 = inlined_call_operand.hbm [shape: f32[2,4,256], index: 9, kind: output, shape index: {}]  }
   0x1   :  { %16 = vsyncpa [#allocation3 + $0x1], 0  ;;  %s1358_s30 = smov 0   ;;  %s1360_s10 = smov 0  }
   0x2   :  { %s1362_s11 = smov 0   ;;  %s1364_s12 = smov 0  }
   0x3 LB: > { %s1379_s13 = sadd.s32 4294967295, %s1290_s12   ;;  %s1125_s14 = sadd.s32 4294967294, %s1290_s12   ;;  %s1290_s12 = sphi %s1364_s12, %s1820_s12   ;;  %s1286_s11 = sphi %s1362_s11, %s1819_s11   ;;  %s1282_s10 = sphi %s1360_s10, %s1818_s10   ;;  %s1278_s30 = sphi %s1358_s30, %s1817_s30  }
   0x4   : > { %s1383_s15 = sadd.s32 1, %s1290_s12   ;;  %s228_s16 = sadd.s32 1, %s1286_s11 }
   0x5   : > { %s225_s17 = ssub.s32 %s1290_s12, %s1383_s15  ;;  %p238_p0 = scmp.ne.s32.totalorder %s1286_s11, %s1282_s10 }
   0x6   : > { %p226_p1 = scmp.eq.s32.totalorder %s225_s17, 0  ;;  %p239_p2 = scmp.eq.s32.totalorder %s1379_s13, 1 }
   0x7   : > { %p244_p3 = scmp.ne.s32.totalorder %s1282_s10, %s1278_s30  ;;  %p245_p4 = scmp.eq.s32.totalorder %s1125_s14, 1 }
   0x8   : > { %s1394_s18 = scalar_select %p226_p1, %s1286_s11, %s228_s16  }
   0x9   : > { %p1396_p5 = por %p239_p2, %p238_p0  ;;  %p1400_p6 = por %p245_p4, %p244_p3 }
   0xa   : > { %p1128_p7 = scmp.ge.s32.totalorder %s1290_s12, 1  ;;  %p300_p8 = scmp.lt.s32.totalorder %s1290_s12, 3 }
   0xc   : > { %p301_p9 = pnand %p1128_p7, %p300_p8 }
   0xd   : > { %p341_p10 = scmp.lt.s32.totalorder (!%p301_p9), %s1379_s13, 1  ;;  %s1295_s29 = smov (!%p301_p9), 64  }
   0xe   : > { %304 = sbr.rel (%p301_p9) target bundleno = 1058 (0x422), region = 56  ;;  %s1296_s14 = smov (!%p301_p9), 48  }
   0xf   : > { %s1811_s17 = smov (!%p301_p9), 16   ;;  %s1299_s21 = smov (!%p301_p9), 80  }
  0x10   : > { %s1300_s22 = smov (!%p301_p9), 112   ;;  %s1304_s26 = smov (!%p301_p9), 127  }
  0x11   : > { %s1305_s27 = smov (!%p301_p9), 1  }
  0x13   : > { %v358_v0 = vld [vmem:[%s1801_s2] sm:$0xf]  ;;  %vm366_vm0 = vcmask 1043456   ;;  %s342_s23 = scalar_select %p341_p10, %s1379_s13, 1  ;;  %vm359_vm1 = vcmask 64512   ;;  %v1168_v16 = vld [vmem:[%s1802_s3 + $0x8] sm:$0xff] }
  0x14   : > { %v368_v1 = vsel %vm366_vm0, %v358_v0, 0  ;;  %v1167_v12 = vld [vmem:[%s1802_s3] sm:$0xff]  ;;  %v1169_v20 = vld [vmem:[%s1802_s3 + $0x10] sm:$0xff]  ;;  %v1170_v24 = vld [vmem:[%s1802_s3 + $0x18] sm:$0xff]  ;;  %v1292_v27 = vmov 1983009808  }
  0x15   : > { %377 = vmatpush.bf16.msra.mxu0 %v368_v1  ;;  %s1165_s24 = sshll.u32 %s342_s23, 5  ;;  %s1166_s25 = sshll.u32 %s342_s23, 3  ;;  %v507_v28 = vunpack.c.l.s4 %v1292_v27  ;;  %vm502_vm2 = vcmask 1047556   ;;  %v1293_v33 = vmov 1934713408   ;;  %vm670_vm3 = vcmask 130048  }
  0x16   : > { %s345_s28 = scalar_lea.vmem %s1799_s0, %s1165_s24  ;;  %s350_s16 = scalar_lea.vmem %s1800_s1, %s1166_s25  ;;  %v531_v34 = vunpack.c.l.s4 %v1293_v33  ;;  %vm672_vm4 = vcmask 261120   ;;  %vm674_vm5 = vcmask 392192   ;;  %vm676_vm6 = vcmask 523264  }
  0x17   : > { %v352_v2 = vld [vmem:[%s345_s28] sm:$0xff]  ;;  %v353_v3 = vld [vmem:[%s345_s28 + $0x8] sm:$0xff]  ;;  %v354_v6 = vld [vmem:[%s345_s28 + $0x10] sm:$0xff]  ;;  %v508_v30 = vunpack.c.0.s8 %v507_v28  ;;  %vm678_vm7 = vcmask 654336   ;;  %vm680_vm8 = vcmask 785408   ;;  %vm682_vm9 = vcmask 916480  }
  0x18   : > { %v691_v4 = vld [vmem:[%s350_s16] sm:$0xff]  ;;  %v356_v5 = vpack.c.bf16 %v353_v3, %v352_v2  ;;  %v355_v7 = vld [vmem:[%s345_s28 + $0x18] sm:$0xff]  ;;  %v1443_v43 = vunpack.c.0.s8 %v531_v34  ;;  %s1294_s28 = smov 96   ;;  %s1297_s16 = smov 32  }
  0x19   : > { %693 = vst [vmem:[#allocation1] ss:$2 sm:$0xff] %v691_v4  ;;  %v357_v8 = vpack.c.bf16 %v355_v7, %v354_v6  ;;  %s1301_s23 = smov 113   ;;  %s1302_s24 = smov 111  }
  0x1a   : > { %1134 = vmatmul.msk.bf16.vlgmr.msra.gmra.mxu0 %vm359_vm1, %v356_v5  ;;  %s1809_s25 = smov 15  }
  0x2a   : > { %1135 = vmatmul.msk.bf16.gmra.mxu0 %vm359_vm1, %v357_v8 }
  0x97   : > { %v379_v9 = vpop.f32.mrf.mxu0 }
  0x98   : > { %v389_v10 = vpack.c.bf16 %v379_v9, %v379_v9 }
  0x9a   : > { %v410_v11 = vsel %vm366_vm0, %v389_v10, 0 }
  0x9b   : > { %419 = vmatpush.bf16.msra.mxu1 %v410_v11 }
  0x9e   : > { %1140 = vmatmul.msk.bf16.vlgmr.msra.gmra.mxu1 %vm359_vm1, %v1167_v12 }
  0x9f   : > { %v381_v13 = vpop.f32.mrf.mxu0 }
  0xa0   : > { %v390_v14 = vpack.c.bf16 %v381_v13, %v381_v13 }
  0xa2   : > { %v435_v15 = vsel %vm366_vm0, %v390_v14, 0 }
  0xa3   : > { %444 = vmatpush.bf16.msra.mxu2 %v435_v15 }
  0xa6   : > { %1145 = vmatmul.msk.bf16.vlgmr.msra.gmra.mxu2 %vm359_vm1, %v1168_v16 }
  0xa7   : > { %v384_v17 = vpop.f32.mrf.mxu0 }
  0xa8   : > { %v391_v18 = vpack.c.bf16 %v384_v17, %v384_v17 }
  0xaa   : > { %v460_v19 = vsel %vm366_vm0, %v391_v18, 0 }
  0xab   : > { %469 = vmatpush.bf16.msra.mxu3 %v460_v19 }
  0xae   : > { %1150 = vmatmul.msk.bf16.vlgmr.msra.gmra.mxu3 %vm359_vm1, %v1169_v20 }
  0xaf   : > { %v386_v21 = vpop.f32.mrf.mxu0 }
  0xb0   : > { %v392_v22 = vpack.c.bf16 %v386_v21, %v386_v21 }
  0xb2   : > { %v485_v23 = vsel %vm366_vm0, %v392_v22, 0 }
  0xb3   : > { %494 = vmatpush.bf16.msrb.mxu1 %v485_v23 }
  0xb6   : > { %1155 = vmatmul.msk.bf16.vlgmr.msrb.gmra.mxu1 %vm359_vm1, %v1170_v24 }
 0x11b   : > { %v421_v25 = vpop.f32.mrf.mxu1 }
 0x11c   : > { %v504_v31 = vrot.slane %v421_v25, 4 }
 0x123   : > { %v423_v26 = vpop.f32.mrf.mxu1 }
 0x124   : > { %v560_v58 = vrot.slane %v423_v26, 4 }
 0x129   : > { %v446_v29 = vpop.f32.mrf.mxu2 }
 0x12a   : > { %v516_v32 = vrot.slane %v446_v29, 4 }
 0x131   : > { %v471_v35 = vpop.f32.mrf.mxu3  ;;  %v448_v51 = vpop.f32.mrf.mxu2 }
 0x132   : > { %v501_v36 = vrot.slane %v471_v35, 4  ;;  %v505_v37 = vsel %vm502_vm2, %v471_v35, %v504_v31  ;;  %v572_v59 = vrot.slane %v448_v51, 4 }
 0x133   : > { %v513_v38 = vperm.slane %v505_v37, %v508_v30  ;;  %v496_v39 = vpop.f32.mrf.mxu1 }
 0x134   : > { %v503_v40 = vsel %vm502_vm2, %v501_v36, %v421_v25  ;;  %v514_v41 = vrot.slane %v496_v39, 4  ;;  %v517_v42 = vsel %vm502_vm2, %v496_v39, %v516_v32 }
 0x135   : > { %v509_v44 = vperm.slane %v503_v40, %v508_v30  ;;  %v540_v45 = vrot.slane %v513_v38, 4  ;;  %v525_v46 = vperm.slane %v517_v42, %v508_v30 }
 0x136   : > { %v515_v47 = vsel %vm502_vm2, %v514_v41, %v446_v29 }
 0x137   : > { %v528_v48 = vrot.slane %v509_v44, 4  ;;  %v521_v49 = vperm.slane %v515_v47, %v508_v30  ;;  %v538_v50 = vrot.slane %v525_v46, 4  ;;  %v541_v52 = vsel %vm502_vm2, %v525_v46, %v540_v45 }
 0x138   : > { %v1448_v53 = vperm.slane %v541_v52, %v1443_v43 }
 0x139   : > { %v526_v54 = vrot.slane %v521_v49, 4  ;;  %v473_v55 = vpop.f32.mrf.mxu3  ;;  %v539_v56 = vsel %vm502_vm2, %v538_v50, %v513_v38  ;;  %v529_v57 = vsel %vm502_vm2, %v521_v49, %v528_v48 }
 0x13a   : > { %v558_v60 = vrot.slane %v473_v55, 4  ;;  %635 = vrot.lane.b32.xlu1 %v1448_v53, %s1294_s28  ;;  %v545_v61 = vperm.slane %v539_v56, %v1443_v43  ;;  %v537_v63 = vperm.slane %v529_v57, %v1443_v43  ;;  %v561_v2 = vsel %vm502_vm2, %v473_v55, %v560_v58 }
 0x13b   : > { %v498_v62 = vpop.f32.mrf.mxu1  ;;  %v527_v0 = vsel %vm502_vm2, %v526_v54, %v509_v44  ;;  %v569_v10 = vperm.slane %v561_v2, %v508_v30  ;;  %v556_v36 = vrot.slane %v1448_v53, 4 }
 0x13c   : > { %v559_v1 = vsel %vm502_vm2, %v558_v60, %v423_v26  ;;  %v570_v3 = vrot.slane %v498_v62, 4  ;;  %v573_v4 = vsel %vm502_vm2, %v498_v62, %v572_v59  ;;  %627 = vrot.lane.b32.xlu0 %v545_v61, %s1295_s29  ;;  %v552_v7 = vrot.slane %v537_v63, 4 }
 0x13d   : > { %v565_v5 = vperm.slane %v559_v1, %v508_v30  ;;  %v581_v6 = vperm.slane %v573_v4, %v508_v30  ;;  %v533_v9 = vperm.slane %v527_v0, %v1443_v43  ;;  %v554_v17 = vrot.slane %v545_v61, 4 }
 0x13e   : > { %v571_v8 = vsel %vm502_vm2, %v570_v3, %v448_v51  ;;  %v553_v12 = vsel %vm502_vm2, 0.0, %v552_v7  ;;  %v596_v26 = vrot.slane %v569_v10, 4  ;;  %v557_v38 = vsel %vm502_vm2, 0.0, %v556_v36  ;;  %v695_v7 = vld.sshfl [vmem:[#allocation1 + $0x8] sm:$0xff pattern:$0x75316420] }
 0x13f   : > { %v594_v11 = vrot.slane %v581_v6, 4  ;;  %v584_v13 = vrot.slane %v565_v5, 4  ;;  %v577_v14 = vperm.slane %v571_v8, %v508_v30  ;;  %623 = vrot.lane.b32.xlu2 %v553_v12, %s1296_s14  ;;  %v550_v15 = vrot.slane %v533_v9, 4 }
 0x140   : > { %v555_v22 = vsel %vm502_vm2, 0.0, %v554_v17  ;;  %v597_v30 = vsel %vm502_vm2, %v581_v6, %v596_v26  ;;  %v839_v26 = vld [vmem:[%s1806_s7] sm:$0xf] }
 0x141   : > { %v595_v16 = vsel %vm502_vm2, %v594_v11, %v569_v10  ;;  %v551_v18 = vsel %vm502_vm2, 0.0, %v550_v15  ;;  %v582_v20 = vrot.slane %v577_v14, 4  ;;  %v585_v21 = vsel %vm502_vm2, %v577_v14, %v584_v13  ;;  %v1531_v15 = vld [vmem:[%s1803_s4 + $0x10] sm:$0x3] }
 0x142   : > { %619 = vrot.lane.b32.xlu1 %v537_v63, %s1297_s16  ;;  %v601_v19 = vperm.slane %v595_v16, %v1443_v43  ;;  %v593_v23 = vperm.slane %v585_v21, %v1443_v43  ;;  %v605_v33 = vperm.slane %v597_v30, %v1443_v43  ;;  %v694_v63 = vld.sshfl [vmem:[#allocation1] sm:$0xff pattern:$0x75316420]  ;;  %v718_v13 = vlaneseq }
 0x143   : > { %v583_v25 = vsel %vm502_vm2, %v582_v20, %v565_v5  ;;  %v822_v17 = vperm.slane %v1531_v15, 0 }
 0x144   : > { %615 = vrot.lane.b32.xlu0 %v551_v18, %s1811_s17  ;;  %v610_v24 = vrot.slane %v601_v19, 4  ;;  %v608_v28 = vrot.slane %v593_v23, 4  ;;  %v589_v29 = vperm.slane %v583_v25, %v1443_v43  ;;  %v612_v35 = vrot.slane %v605_v33, 4 }
 0x145   : > { %v1533_v16 = vand.u32 127, %v718_v13  ;;  %v823_v18 = vperm.slane %v1531_v15, 1 }
 0x146   : > { %v611_v27 = vsel %vm502_vm2, 0.0, %v610_v24  ;;  %v609_v31 = vsel %vm502_vm2, 0.0, %v608_v28  ;;  %v606_v32 = vrot.slane %v589_v29, 4  ;;  %v613_v37 = vsel %vm502_vm2, 0.0, %v612_v35  ;;  %v1557_v28 = vld [vmem:[%s1803_s4 + $0xe] sm:$0x3] }
 0x147   : > { %631 = vrot.lane.b32.xlu2 %v555_v22, %s1299_s21  ;;  %vm818_vm10 = vcmp.lt.s32.totalorder %v1533_v16, 111  ;;  %vm790_vm11 = vcmp.lt.s32.totalorder %v1533_v16, 113  ;;  %vm804_vm12 = vcmp.lt.s32.totalorder %v1533_v16, 112  ;;  %v808_v36 = vperm.slane %v1557_v28, 0 }
 0x148   : > { %v607_v34 = vsel %vm502_vm2, 0.0, %v606_v32  ;;  %vm776_vm13 = vcmp.lt.s32.totalorder %v1533_v16, 127  ;;  %vm762_vm14 = vcmp.lt.s32.totalorder %v1533_v16, 1  ;;  %vm748_vm15 = vcmp.lt.s32.totalorder %v1533_v16, 15 }
 0x149   : > { %vm720_vm1 = vcmp.lt.s32.totalorder %v1533_v16, 17  ;;  %vm734_vm2 = vcmp.lt.s32.totalorder %v1533_v16, 16 }
 0x14a   : > { %647 = vrot.lane.b32.xlu1 %v593_v23, %s1297_s16  ;;  %v1545_v23 = vld [vmem:[%s1803_s4 + $0xc] sm:$0x3]  ;;  %s1171_s16 = sshll.u32 %s1379_s13, 3 }
 0x14b   : > { %v794_v32 = vperm.slane %v1545_v23, 0 }
 0x14c   : > { %659 = vrot.lane.b32.xlu0 %v611_v27, %s1299_s21 }
 0x14f   : > { %651 = vrot.lane.b32.xlu2 %v609_v31, %s1296_s14  ;;  %v1307_v31 = vmov 0   ;;  %s1049_s14 = scalar_lea.hbm %s1808_s9, %s1171_s16  ;;  %s1248_s16 = scalar_lea.hbm %s1808_s9, 16 }
 0x150   : > { %1227 = vset.pattern.permute.xlu0 %v1307_v31 }
 0x152   : > { %655 = vrot.lane.b32.xlu1 %v601_v19, %s1295_s29 }
 0x154   : > { %643 = vrot.lane.b32.xlu0 %v607_v34, %s1811_s17 }
 0x157   : > { %663 = vrot.lane.b32.xlu2 %v605_v33, %s1294_s28  ;;  %s1306_s28 = smov 17   ;;  %v795_v33 = vperm.slane %v1545_v23, 1 }
 0x15a   : > { %667 = vrot.lane.b32.xlu1 %v613_v37, %s1300_s22  ;;  %v809_v37 = vperm.slane %v1557_v28, 1 }
 0x15c   : > { %639 = vrot.lane.b32.xlu0 %v557_v38, %s1300_s22 }
 0x199   : > { %v624_v41 = vpop.permute.xlu2 %623 }
 0x1a1   : > { %v632_v44 = vpop.permute.xlu2 %631 }
 0x1a9   : > { %v652_v49 = vpop.permute.xlu2 %651 }
 0x1ac   : > { %v636_v39 = vpop.permute.xlu1 %635 }
 0x1ae   : > { %v628_v40 = vpop.permute.xlu0 %627 }
 0x1b1   : > { %v664_v62 = vpop.permute.xlu2 %663 }
 0x1b4   : > { %v620_v42 = vpop.permute.xlu1 %619 }
 0x1b6   : > { %v616_v43 = vpop.permute.xlu0 %615 }
 0x1b7   : > { %v671_v47 = vsel %vm670_vm3, %v533_v9, %v616_v43 }
 0x1b8   : > { %v673_v48 = vsel %vm672_vm4, %v671_v47, %v620_v42 }
 0x1b9   : > { %v675_v50 = vsel %vm674_vm5, %v673_v48, %v624_v41  ;;  %v1586_v48 = vld [vmem:[%s1803_s4 + $0xa] sm:$0x3] }
 0x1ba   : > { %v677_v55 = vsel %vm676_vm6, %v675_v50, %v628_v40 }
 0x1bb   : > { %v679_v58 = vsel %vm678_vm7, %v677_v55, %v632_v44  ;;  %v1600_v55 = vld [vmem:[%s1803_s4 + $0x4] sm:$0x3] }
 0x1bc   : > { %v648_v45 = vpop.permute.xlu1 %647  ;;  %v681_v60 = vsel %vm680_vm8, %v679_v58, %v636_v39 }
 0x1be   : > { %v660_v46 = vpop.permute.xlu0 %659 }
 0x1c4   : > { %v656_v51 = vpop.permute.xlu1 %655 }
 0x1c6   : > { %v644_v52 = vpop.permute.xlu0 %643 }
 0x1c7   : > { %v684_v53 = vsel %vm670_vm3, %v589_v29, %v644_v52  ;;  %v1591_v52 = vld [vmem:[%s1803_s4 + $0x6] sm:$0x3]  ;;  %vm845_vm3 = vcmask 588800  }
 0x1c8   : > { %v685_v54 = vsel %vm672_vm4, %v684_v53, %v648_v45  ;;  %v780_v53 = vperm.slane %v1586_v48, 0  ;;  %v767_v58 = vperm.slane %v1591_v52, 1  ;;  %vm996_vm4 = vcmask 1041408  }
 0x1c9   : > { %v686_v56 = vsel %vm674_vm5, %v685_v54, %v652_v49  ;;  %v781_v54 = vperm.slane %v1586_v48, 1  ;;  %vm992_vm5 = vcmask 293888  }
 0x1ca   : > { %v687_v57 = vsel %vm676_vm6, %v686_v56, %v656_v51 }
 0x1cb   : > { %v688_v59 = vsel %vm678_vm7, %v687_v57, %v660_v46  ;;  %v766_v57 = vperm.slane %v1591_v52, 0 }
 0x1cc   : > { %v668_v1 = vpop.permute.xlu1 %667  ;;  %v689_v2 = vsel %vm680_vm8, %v688_v59, %v664_v62 }
 0x1cd   : > { %v690_v5 = vsel %vm682_vm9, %v689_v2, %v668_v1  ;;  %v753_v1 = vperm.slane %v1600_v55, 1 }
 0x1ce   : > { %v640_v61 = vpop.permute.xlu0 %639  ;;  %v701_v6 = vrot.slane %v690_v5, 4  ;;  %v1624_v5 = vld [vmem:[%s1803_s4] sm:$0x3] }
 0x1cf   : > { %v683_v0 = vsel %vm682_vm9, %v681_v60, %v640_v61 }
 0x1d0   : > { %v700_v3 = vrot.slane %v683_v0, 4  ;;  %v1496_v8 = vsel %vm366_vm0, %v695_v7, %v701_v6  ;;  %v752_v0 = vperm.slane %v1600_v55, 0 }
 0x1d2   : > { %v1487_v4 = vsel %vm366_vm0, %v694_v63, %v700_v3 }
 0x1d3   : > { %800 = vrot.lane.b32.xlu0 %v1487_v4, %s1300_s22  ;;  %786 = vrot.lane.b32.xlu1 %v1487_v4, %s1301_s23 }
 0x1d4   : > { %814 = vrot.lane.b32.xlu2 %v1487_v4, %s1302_s24 }
 0x1db   : > { %816 = vrot.lane.b32.xlu0 %v1496_v8, %s1302_s24  ;;  %744 = vrot.lane.b32.xlu1 %v1487_v4, %s1809_s25 }
 0x1dc   : > { %772 = vrot.lane.b32.xlu2 %v1487_v4, %s1304_s26 }
 0x1e3   : > { %758 = vrot.lane.b32.xlu0 %v1487_v4, %s1305_s27  ;;  %802 = vrot.lane.b32.xlu1 %v1496_v8, %s1300_s22 }
 0x1e4   : > { %714 = vrot.lane.b32.xlu2 %v1487_v4, %s1306_s28 }
 0x1eb   : > { %774 = vrot.lane.b32.xlu0 %v1496_v8, %s1304_s26  ;;  %760 = vrot.lane.b32.xlu1 %v1496_v8, %s1305_s27 }
 0x1ec   : > { %788 = vrot.lane.b32.xlu2 %v1496_v8, %s1301_s23 }
 0x1f3   : > { %716 = vrot.lane.b32.xlu0 %v1496_v8, %s1306_s28  ;;  %730 = vrot.lane.b32.xlu1 %v1487_v4, %s1811_s17 }
 0x1f4   : > { %746 = vrot.lane.b32.xlu2 %v1496_v8, %s1809_s25  ;;  %s1053_s25 = sshll.u32 %s1049_s14, 4  ;;  %s1054_s25 = int_to_ptr.hbm [resolvable:$true] %s1053_s25 }
 0x1fb   : > { %842 = vperm.xlu0 %1227, %v839_v26  }
 0x1fc   : > { %732 = vrot.lane.b32.xlu2 %v1496_v8, %s1811_s17  ;;  %s1815_s17 = smov 16  }
 0x22e   : > { %v815_v9 = vpop.permute.xlu2 %814 }
 0x236   : > { %v1524_v10 = vpop.permute.xlu2 %772 }
 0x23e   : > { %v1526_v14 = vpop.permute.xlu2 %714 }
 0x245   : > { %v801_v11 = vpop.permute.xlu0 %800  ;;  %v787_v12 = vpop.permute.xlu1 %786 }
 0x246   : > { %v789_v27 = vpop.permute.xlu2 %788 }
 0x247   : > { %v791_v38 = vsel %vm790_vm11, %v787_v12, %v789_v27  ;;  %v792_v39 = vsel %vm790_vm11, %v789_v27, %v787_v12 }
 0x248   : > { %v798_v44 = vmul.f32 %v794_v32, %v791_v38  ;;  %v799_v45 = vmul.f32 %v795_v33, %v792_v39 }
 0x24d   : > { %v817_v19 = vpop.permute.xlu0 %816  ;;  %v745_v20 = vpop.permute.xlu1 %744 }
 0x24e   : > { %v819_v21 = vsel %vm818_vm10, %v815_v9, %v817_v19  ;;  %v820_v22 = vsel %vm818_vm10, %v817_v19, %v815_v9  ;;  %v747_v51 = vpop.permute.xlu2 %746  ;;  %v1633_v9 = vld [vmem:[%s1803_s4 + $0x2] sm:$0x3]  ;;  %v724_v19 = vperm.slane %v1624_v5, 0 }
 0x24f   : > { %v826_v24 = vmul.f32 %v822_v17, %v819_v21  ;;  %v827_v25 = vmul.f32 %v823_v18, %v820_v22  ;;  %v749_v6 = vsel %vm748_vm15, %v745_v20, %v747_v51  ;;  %v750_v7 = vsel %vm748_vm15, %v747_v51, %v745_v20 }
 0x250   : > { %v725_v20 = vperm.slane %v1624_v5, 1  ;;  %v756_v21 = vmul.f32 %v752_v0, %v750_v7  ;;  %v757_v22 = vmul.f32 %v753_v1, %v749_v6 }
 0x251   : > { %v836_v29 = vpack.c.bf16 %v826_v24, %v826_v24  ;;  %v837_v30 = vpack.c.bf16 %v827_v25, %v827_v25 }
 0x253   : > { %v850_v34 = vsel %vm366_vm0, %v836_v29, 0  ;;  %v853_v35 = vsel %vm366_vm0, %v837_v30, 0 }
 0x254   : > { %858 = vmatpush.bf16.msrb.mxu2 %v850_v34  ;;  %871 = vmatpush.bf16.msrb.mxu3 %v853_v35 }
 0x255   : > { %v759_v40 = vpop.permute.xlu0 %758  ;;  %v803_v41 = vpop.permute.xlu1 %802 }
 0x256   : > { %v805_v42 = vsel %vm804_vm12, %v801_v11, %v803_v41  ;;  %v806_v43 = vsel %vm804_vm12, %v803_v41, %v801_v11  ;;  %v733_v24 = vpop.permute.xlu2 %732 }
 0x257   : > { %v812_v46 = vmul.f32 %v808_v36, %v805_v42  ;;  %v813_v47 = vmul.f32 %v809_v37, %v806_v43  ;;  %v838_v43 = vld [vmem:[%s1804_s5] sm:$0x3] }
 0x259   : > { %v834_v49 = vpack.c.bf16 %v812_v46, %v798_v44  ;;  %v835_v50 = vpack.c.bf16 %v813_v47, %v799_v45 }
 0x25b   : > { %859 = vmatpush.bf16.msrb.mxu2 %v834_v49  ;;  %872 = vmatpush.bf16.msrb.mxu3 %v835_v50 }
 0x25d   : > { %v775_v56 = vpop.permute.xlu0 %774  ;;  %v761_v59 = vpop.permute.xlu1 %760 }
 0x25e   : > { %v777_v60 = vsel %vm776_vm13, %v1524_v10, %v775_v56  ;;  %v778_v61 = vsel %vm776_vm13, %v775_v56, %v1524_v10  ;;  %v763_v62 = vsel %vm762_vm14, %v759_v40, %v761_v59  ;;  %v764_v63 = vsel %vm762_vm14, %v761_v59, %v759_v40 }
 0x25f   : > { %v784_v2 = vmul.f32 %v780_v53, %v777_v60  ;;  %v785_v3 = vmul.f32 %v781_v54, %v778_v61  ;;  %v770_v10 = vmul.f32 %v766_v57, %v764_v63  ;;  %v771_v11 = vmul.f32 %v767_v58, %v763_v62  ;;  %v986_v60 = vld [vmem:[%s1807_s8] sm:$0xf] }
 0x261   : > { %v832_v12 = vpack.c.bf16 %v784_v2, %v1487_v4  ;;  %v833_v13 = vpack.c.bf16 %v785_v3, %v1496_v8  ;;  %v738_v4 = vperm.slane %v1633_v9, 0  ;;  %v739_v8 = vperm.slane %v1633_v9, 1 }
 0x262   : > { %v830_v27 = vpack.c.bf16 %v770_v10, %v756_v21  ;;  %v831_v29 = vpack.c.bf16 %v771_v11, %v757_v22 }
 0x263   : > { %860 = vmatpush.bf16.msrb.mxu2 %v832_v12  ;;  %873 = vmatpush.bf16.msrb.mxu3 %v833_v13 }
 0x265   : > { %v717_v25 = vpop.permute.xlu0 %716  ;;  %v731_v26 = vpop.permute.xlu1 %730 }
 0x266   : > { %v721_v30 = vsel %vm720_vm1, %v1526_v14, %v717_v25  ;;  %v722_v31 = vsel %vm720_vm1, %v717_v25, %v1526_v14  ;;  %v735_v34 = vsel %vm734_vm2, %v731_v26, %v733_v24  ;;  %v736_v35 = vsel %vm734_vm2, %v733_v24, %v731_v26 }
 0x267   : > { %v728_v38 = vmul.f32 %v724_v19, %v722_v31  ;;  %v729_v39 = vmul.f32 %v725_v20, %v721_v30  ;;  %v742_v40 = vmul.f32 %v738_v4, %v736_v35  ;;  %v743_v41 = vmul.f32 %v739_v8, %v735_v34  ;;  %861 = vmatpush.bf16.msrb.mxu2 %v830_v27 }
 0x268   : > { %874 = vmatpush.bf16.msrb.mxu3 %v831_v29 }
 0x269   : > { %v828_v14 = vpack.c.bf16 %v742_v40, %v728_v38  ;;  %v829_v42 = vpack.c.bf16 %v743_v41, %v729_v39 }
 0x26b   : > { %862 = vmatpush.bf16.msrb.mxu2 %v828_v14 }
 0x26c   : > { %875 = vmatpush.bf16.msrb.mxu3 %v829_v42 }
 0x26d   : > { %v843_v44 = vpop.permute.xlu0 %842 }
 0x26e   : > { %1156 = vmatmul.msk.bf16.vlgmr.msrb.gmra.mxu2 %vm845_vm3, %v838_v43 }
 0x26f   : > { %1157 = vmatmul.msk.bf16.vlgmr.msrb.gmra.mxu3 %vm845_vm3, %v838_v43 }
 0x2f1   : > { %v864_v45 = vpop.f32.mrf.mxu2 }
 0x2f2   : > { %v865_v46 = vadd.f32 %v864_v45, %v843_v44  ;;  %v877_v47 = vpop.f32.mrf.mxu3 }
 0x2f3   : > { %v878_v49 = vadd.f32 %v877_v47, %v843_v44 }
 0x2f4   : > { %v881_v50 = vmax.f32 %v865_v46, 0.0 }
 0x2f5   : > { %v882_v51 = vmax.f32 %v878_v49, 0.0 }
 0x2f6   : > { %931 = vrot.lane.b32.xlu0 %v881_v50, %s1300_s22  ;;  %939 = vrot.lane.b32.xlu1 %v881_v50, %s1302_s24 }
 0x2f7   : > { %941 = vrot.lane.b32.xlu2 %v882_v51, %s1302_s24 }
 0x2f9   : > { %v866_v56 = vpop.f32.mrf.mxu2 }
 0x2fa   : > { %v879_v59 = vpop.f32.mrf.mxu3 }
 0x2fe   : > { %915 = vrot.lane.b32.xlu1 %v881_v50, %s1304_s26  ;;  %925 = vrot.lane.b32.xlu0 %v882_v51, %s1301_s23 }
 0x2ff   : > { %917 = vrot.lane.b32.xlu2 %v882_v51, %s1304_s26  ;;  %s1816_s26 = smov 15  }
 0x306   : > { %907 = vrot.lane.b32.xlu0 %v881_v50, %s1305_s27  ;;  %933 = vrot.lane.b32.xlu1 %v882_v51, %s1300_s22 }
 0x307   : > { %923 = vrot.lane.b32.xlu2 %v881_v50, %s1301_s23 }
 0x30e   : > { %885 = vrot.lane.b32.xlu0 %v882_v51, %s1306_s28  ;;  %891 = vrot.lane.b32.xlu1 %v881_v50, %s1815_s17 }
 0x30f   : > { %893 = vrot.lane.b32.xlu2 %v882_v51, %s1815_s17 }
 0x316   : > { %989 = vperm.xlu0 %1227, %v986_v60   ;;  %909 = vrot.lane.b32.xlu1 %v882_v51, %s1305_s27  ;;  %s338_s27 = sand.u32 1, %s1282_s10  }
 0x317   : > { %883 = vrot.lane.b32.xlu2 %v881_v50, %s1306_s28  ;;  %s1129_s28 = sshll.u32 %s338_s27, 3  ;;  %s1038_s13 = scalar_lea.sflag [#allocation3], %s338_s27 }
 0x318   : > { %s340_s17 = scalar_lea.vmem [#allocation2], %s1129_s28 }
 0x319   : > { %s1051_s24 = sshll.u32 %s340_s17, 4  ;;  %s1052_s24 = int_to_ptr.vmem [resolvable:$true] %s1051_s24 }
 0x31e   : > { %899 = vrot.lane.b32.xlu1 %v881_v50, %s1816_s26 }
 0x31f   : > { %901 = vrot.lane.b32.xlu2 %v882_v51, %s1816_s26  ;;  %s1242_s26 = sshra.s32 %s1054_s25, 4  ;;  %s1243_s26 = int_to_ptr.hbm [resolvable:$true] %s1242_s26 }
 0x320   : > { %s1244_s22 = scalar_lea.hbm %s1243_s26, 8  ;;  %p1249_p0 = scmp.lt.s32.totalorder %s1243_s26, %s1808_s9 }
 0x321   : > { %p1245_p11 = scmp.ne.s32.totalorder %s1243_s26, %s1244_s22  ;;  %p1250_p1 = scmp.lt.s32.totalorder %s1248_s16, %s1244_s22 }
 0x323   : > { %p1246_p12 = pnand %p1245_p11, %p1396_p5  ;;  %p1251_p2 = por %p1250_p1, %p1249_p0 }
 0x325   : > { %p1247_p13 = pneg %p1246_p12 }
 0x327   : > { %p1252_p3 = pnand %p1251_p2, %p1247_p13 }
 0x351   : > { %v942_v61 = vpop.permute.xlu2 %941 }
 0x359   : > { %v918_v62 = vpop.permute.xlu2 %917 }
 0x361   : > { %v924_v24 = vpop.permute.xlu2 %923 }
 0x368   : > { %v940_v63 = vpop.permute.xlu1 %939  ;;  %v932_v10 = vpop.permute.xlu0 %931 }
 0x369   : > { %v943_v2 = vsel %vm818_vm10, %v940_v63, %v942_v61  ;;  %v944_v3 = vsel %vm818_vm10, %v942_v61, %v940_v63 }
 0x36a   : > { %v945_v6 = vmul.f32 %v943_v2, %v822_v17  ;;  %v946_v7 = vmul.f32 %v944_v3, %v823_v18 }
 0x36c   : > { %v984_v11 = vpack.c.bf16 %v946_v7, %v946_v7  ;;  %v983_v12 = vpack.c.bf16 %v945_v6, %v945_v6 }
 0x36e   : > { %v998_v13 = vsel %vm996_vm4, %v983_v12, 0  ;;  %v1001_v21 = vsel %vm996_vm4, %v984_v11, 0 }
 0x36f   : > { %1008 = vmatpush.bf16.msrb.mxu0 %v998_v13  ;;  %1021 = vmatpush.bf16.msra.mxu1 %v1001_v21 }
 0x370   : > { %v916_v22 = vpop.permute.xlu1 %915  ;;  %v926_v18 = vpop.permute.xlu0 %925 }
 0x371   : > { %v919_v25 = vsel %vm776_vm13, %v916_v22, %v918_v62  ;;  %v920_v26 = vsel %vm776_vm13, %v918_v62, %v916_v22  ;;  %v927_v29 = vsel %vm790_vm11, %v924_v24, %v926_v18  ;;  %v928_v30 = vsel %vm790_vm11, %v926_v18, %v924_v24 }
 0x372   : > { %v921_v15 = vmul.f32 %v919_v25, %v780_v53  ;;  %v922_v17 = vmul.f32 %v920_v26, %v781_v54  ;;  %v894_v54 = vpop.permute.xlu2 %893  ;;  %v929_v39 = vmul.f32 %v927_v29, %v794_v32  ;;  %v930_v40 = vmul.f32 %v928_v30, %v795_v33 }
 0x374   : > { %v961_v35 = vrot.slane %v921_v15, 4  ;;  %v962_v38 = vrot.slane %v922_v17, 4 }
 0x376   : > { %v975_v42 = vsel %vm366_vm0, %v881_v50, %v961_v35  ;;  %v976_v44 = vsel %vm366_vm0, %v882_v51, %v962_v38 }
 0x378   : > { %v934_v27 = vpop.permute.xlu1 %933  ;;  %v908_v46 = vpop.permute.xlu0 %907 }
 0x379   : > { %v935_v31 = vsel %vm804_vm12, %v932_v10, %v934_v27  ;;  %v936_v34 = vsel %vm804_vm12, %v934_v27, %v932_v10 }
 0x37a   : > { %v937_v48 = vmul.f32 %v935_v31, %v808_v36  ;;  %v938_v53 = vmul.f32 %v936_v34, %v809_v37  ;;  %v884_v32 = vpop.permute.xlu2 %883 }
 0x37c   : > { %v967_v41 = vrot.slane %v937_v48, 4  ;;  %v968_v14 = vrot.slane %v938_v53, 4 }
 0x37e   : > { %v977_v43 = vsel %vm366_vm0, %v929_v39, %v967_v41  ;;  %v978_v36 = vsel %vm366_vm0, %v930_v40, %v968_v14 }
 0x37f   : > { %v981_v45 = vpack.c.bf16 %v977_v43, %v975_v42  ;;  %v982_v28 = vpack.c.bf16 %v978_v36, %v976_v44 }
 0x380   : > { %v892_v37 = vpop.permute.xlu1 %891  ;;  %v886_v49 = vpop.permute.xlu0 %885 }
 0x381   : > { %1009 = vmatpush.bf16.msrb.mxu0 %v981_v45  ;;  %1022 = vmatpush.bf16.msra.mxu1 %v982_v28  ;;  %v895_v23 = vsel %vm734_vm2, %v892_v37, %v894_v54  ;;  %v896_v33 = vsel %vm734_vm2, %v894_v54, %v892_v37  ;;  %v887_v60 = vsel %vm720_vm1, %v884_v32, %v886_v49 }
 0x382   : > { %v897_v56 = vmul.f32 %v896_v33, %v738_v4  ;;  %v898_v59 = vmul.f32 %v895_v23, %v739_v8  ;;  %v888_v61 = vsel %vm720_vm1, %v886_v49, %v884_v32  ;;  %v902_v2 = vpop.permute.xlu2 %901  ;;  %v890_v4 = vmul.f32 %v887_v60, %v725_v20 }
 0x383   : > { %v889_v9 = vmul.f32 %v888_v61, %v724_v19 }
 0x384   : > { %v949_v3 = vrot.slane %v897_v56, 4  ;;  %v950_v6 = vrot.slane %v898_v59, 4 }
 0x386   : > { %v971_v19 = vsel %vm366_vm0, %v889_v9, %v949_v3  ;;  %v972_v20 = vsel %vm366_vm0, %v890_v4, %v950_v6 }
 0x388   : > { %v910_v47 = vpop.permute.xlu1 %909  ;;  %v990_v55 = vpop.permute.xlu0 %989 }
 0x389   : > { %v911_v50 = vsel %vm762_vm14, %v908_v46, %v910_v47  ;;  %v912_v51 = vsel %vm762_vm14, %v910_v47, %v908_v46 }
 0x38a   : > { %v913_v62 = vmul.f32 %v912_v51, %v766_v57  ;;  %v914_v63 = vmul.f32 %v911_v50, %v767_v58 }
 0x38c   : > { %v955_v57 = vrot.slane %v913_v62, 4  ;;  %v956_v52 = vrot.slane %v914_v63, 4 }
 0x390   : > { %v900_v7 = vpop.permute.xlu1 %899 }
 0x391   : > { %v903_v8 = vsel %vm748_vm15, %v900_v7, %v902_v2  ;;  %v904_v10 = vsel %vm748_vm15, %v902_v2, %v900_v7 }
 0x392   : > { %v905_v58 = vmul.f32 %v904_v10, %v752_v0  ;;  %v906_v11 = vmul.f32 %v903_v8, %v753_v1  ;;  %v985_v0 = vld [vmem:[%s1805_s6] sm:$0x3] }
 0x394   : > { %v973_v5 = vsel %vm366_vm0, %v905_v58, %v955_v57  ;;  %v974_v12 = vsel %vm366_vm0, %v906_v11, %v956_v52 }
 0x395   : > { %v979_v16 = vpack.c.bf16 %v973_v5, %v971_v19  ;;  %v980_v13 = vpack.c.bf16 %v974_v12, %v972_v20 }
 0x397   : > { %1010 = vmatpush.bf16.msrb.mxu0 %v979_v16  ;;  %1023 = vmatpush.bf16.msra.mxu1 %v980_v13 }
 0x39a   : > { %1158 = vmatmul.msk.bf16.vlgmr.msrb.gmra.mxu0 %vm992_vm5, %v985_v0  ;;  %1159 = vmatmul.msk.bf16.vlgmr.msra.gmra.mxu1 %vm992_vm5, %v985_v0 }
 0x417   : > { %v1012_v1 = vpop.f32.mrf.mxu0  ;;  %v1025_v21 = vpop.f32.mrf.mxu1 }
 0x418   : > { %v1013_v22 = vadd.f32 %v1012_v1, %v990_v55  ;;  %v1026_v24 = vadd.f32 %v1025_v21, %v990_v55 }
 0x41a   : > { %v1030_v25 = vmax.f32 %v1026_v24, 0.0  ;;  %v1029_v26 = vmax.f32 %v1013_v22, 0.0 }
 0x41c   : > { %v1033_v15 = vrot.slane %v1030_v25, 4 }
 0x41e   : > { %v1034_v17 = vsel %vm366_vm0, %v1029_v26, %v1033_v15 }
 0x41f   : > { %v1027_v18 = vpop.f32.mrf.mxu1  ;;  %v1014_v27 = vpop.f32.mrf.mxu0  ;;  %1036 = vst [vmem:[%s340_s17] sm:$0xff] %v1034_v17 }
 0x420   : > { %1255 = shalt.err (!%p1252_p3)
}
 0x421   : > { %1172 = dma.vmem_to_hbm [thread:$0]  (%p1396_p5), %s1052_s24, 128, %s1054_s25, %s1038_s13  }
 0x422 PF: > { %p1178_p4 = scmp.ge.s32.totalorder %s1290_s12, 2  ;;  %s1065_s27 = sand.u32 1, %s1278_s30  }
 0x423   : > { %s1066_s14 = scalar_lea.sflag [#allocation3], %s1065_s27 }
 0x424   : > { %p1175_p7 = pnand %p1178_p4, %p1400_p6 }
 0x426   : > { %p1176_p8 = pneg %p1175_p7 }
 0x428   : > { %1273 = dma.done.wait (%p1176_p8), %s1066_s14, 128  }
 0x429   : > { %1275 = vsyncadd (%p1176_p8), %s1066_s14, 4294967168  ;;  %p19_p9 = scmp.ge.s32.totalorder %s1383_s15, 4   ;;  %s1817_s30 = smov %s1282_s10 }
 0x42a   : > { %s1818_s10 = smov %s1286_s11  ;;  %s1819_s11 = smov %s1394_s18 }
 0x42b   : > { %s1820_s12 = smov %s1383_s15  ;;  %21 = sbr.rel (!%p19_p9) target bundleno = 3 (0x3), region = 94 }
 0x430   :  { %1072 = vsyncpa [#allocation3], 1 }
 0x431   :  { %1074 = vsyncpa [#allocation3 + $0x1], 1 }

// kernel: tpu_custom_call.1
= control target key start
LH: loop header
LB: loop body
LE: loop exit
PB: predicated region body
PF: predicated region fallthrough
CT: control target
= control target key end

     0   :  { %14 = vsyncpa [#allocation3], 0  ;;  %s1799_s0 = inlined_call_operand.vmem [shape: f32[2,32,8], index: 0, kind: input, shape index: {}]   ;;  %s1800_s1 = inlined_call_operand.vmem [shape: f32[2,4,256], index: 1, kind: input, shape index: {}]   ;;  %s1801_s2 = inlined_call_operand.vmem [shape: bf16[8,16], index: 2, kind: input, shape index: {}]   ;;  %s1802_s3 = inlined_call_operand.vmem [shape: bf16[4,16,8], index: 3, kind: input, shape index: {}]   ;;  %s1803_s4 = inlined_call_operand.vmem [shape: f32[9,1,256], index: 4, kind: input, shape index: {}]   ;;  %s1804_s5 = inlined_call_operand.vmem [shape: bf16[4,72], index: 5, kind: input, shape index: {}]   ;;  %s1805_s6 = inlined_call_operand.vmem [shape: bf16[4,36], index: 6, kind: input, shape index: {}]   ;;  %s1806_s7 = inlined_call_operand.vmem [shape: f32[4,1], index: 7, kind: input, shape index: {}]   ;;  %s1807_s8 = inlined_call_operand.vmem [shape: f32[4,1], index: 8, kind: input, shape index: {}]   ;;  %s1808_s9 = inlined_call_operand.hbm [shape: f32[2,4,256], index: 9, kind: output, shape index: {}]  }
   0x1   :  { %16 = vsyncpa [#allocation3 + $0x1], 0  ;;  %s1358_s30 = smov 0   ;;  %s1360_s10 = smov 0  }
   0x2   :  { %s1362_s11 = smov 0   ;;  %s1364_s12 = smov 0  }
   0x3 LB: > { %s1379_s13 = sadd.s32 4294967295, %s1290_s12   ;;  %s1125_s14 = sadd.s32 4294967294, %s1290_s12   ;;  %s1290_s12 = sphi %s1364_s12, %s1820_s12   ;;  %s1286_s11 = sphi %s1362_s11, %s1819_s11   ;;  %s1282_s10 = sphi %s1360_s10, %s1818_s10   ;;  %s1278_s30 = sphi %s1358_s30, %s1817_s30  }
   0x4   : > { %s1383_s15 = sadd.s32 1, %s1290_s12   ;;  %s228_s16 = sadd.s32 1, %s1286_s11 }
   0x5   : > { %s225_s17 = ssub.s32 %s1290_s12, %s1383_s15  ;;  %p238_p0 = scmp.ne.s32.totalorder %s1286_s11, %s1282_s10 }
   0x6   : > { %p226_p1 = scmp.eq.s32.totalorder %s225_s17, 0  ;;  %p239_p2 = scmp.eq.s32.totalorder %s1379_s13, 1 }
   0x7   : > { %p244_p3 = scmp.ne.s32.totalorder %s1282_s10, %s1278_s30  ;;  %p245_p4 = scmp.eq.s32.totalorder %s1125_s14, 1 }
   0x8   : > { %s1394_s18 = scalar_select %p226_p1, %s1286_s11, %s228_s16  }
   0x9   : > { %p1396_p5 = por %p239_p2, %p238_p0  ;;  %p1400_p6 = por %p245_p4, %p244_p3 }
   0xa   : > { %p1128_p7 = scmp.ge.s32.totalorder %s1290_s12, 1  ;;  %p300_p8 = scmp.lt.s32.totalorder %s1290_s12, 3 }
   0xc   : > { %p301_p9 = pnand %p1128_p7, %p300_p8 }
   0xd   : > { %p341_p10 = scmp.lt.s32.totalorder (!%p301_p9), %s1379_s13, 1  ;;  %s1295_s29 = smov (!%p301_p9), 64  }
   0xe   : > { %304 = sbr.rel (%p301_p9) target bundleno = 1058 (0x422), region = 56  ;;  %s1296_s14 = smov (!%p301_p9), 48  }
   0xf   : > { %s1811_s17 = smov (!%p301_p9), 16   ;;  %s1299_s21 = smov (!%p301_p9), 80  }
  0x10   : > { %s1300_s22 = smov (!%p301_p9), 112   ;;  %s1304_s26 = smov (!%p301_p9), 127  }
  0x11   : > { %s1305_s27 = smov (!%p301_p9), 1  }
  0x13   : > { %v358_v0 = vld [vmem:[%s1801_s2] sm:$0xf]  ;;  %vm366_vm0 = vcmask 1043456   ;;  %s342_s23 = scalar_select %p341_p10, %s1379_s13, 1  ;;  %vm359_vm1 = vcmask 64512   ;;  %v1168_v16 = vld [vmem:[%s1802_s3 + $0x8] sm:$0xff] }
  0x14   : > { %v368_v1 = vsel %vm366_vm0, %v358_v0, 0  ;;  %v1167_v12 = vld [vmem:[%s1802_s3] sm:$0xff]  ;;  %v1169_v20 = vld [vmem:[%s1802_s3 + $0x10] sm:$0xff]  ;;  %v1170_v24 = vld [vmem:[%s1802_s3 + $0x18] sm:$0xff]  ;;  %v1292_v27 = vmov 1983009808  }
  0x15   : > { %377 = vmatpush.bf16.msra.mxu0 %v368_v1  ;;  %s1165_s24 = sshll.u32 %s342_s23, 5  ;;  %s1166_s25 = sshll.u32 %s342_s23, 3  ;;  %v507_v28 = vunpack.c.l.s4 %v1292_v27  ;;  %vm502_vm2 = vcmask 1047556   ;;  %v1293_v33 = vmov 1934713408   ;;  %vm670_vm3 = vcmask 130048  }
  0x16   : > { %s345_s28 = scalar_lea.vmem %s1799_s0, %s1165_s24  ;;  %s350_s16 = scalar_lea.vmem %s1800_s1, %s1166_s25  ;;  %v531_v34 = vunpack.c.l.s4 %v1293_v33  ;;  %vm672_vm4 = vcmask 261120   ;;  %vm674_vm5 = vcmask 392192   ;;  %vm676_vm6 = vcmask 523264  }
  0x17   : > { %v352_v2 = vld [vmem:[%s345_s28] sm:$0xff]  ;;  %v353_v3 = vld [vmem:[%s345_s28 + $0x8] sm:$0xff]  ;;  %v354_v6 = vld [vmem:[%s345_s28 + $0x10] sm:$0xff]  ;;  %v508_v30 = vunpack.c.0.s8 %v507_v28  ;;  %vm678_vm7 = vcmask 654336   ;;  %vm680_vm8 = vcmask 785408   ;;  %vm682_vm9 = vcmask 916480  }
  0x18   : > { %v691_v4 = vld [vmem:[%s350_s16] sm:$0xff]  ;;  %v356_v5 = vpack.c.bf16 %v353_v3, %v352_v2  ;;  %v355_v7 = vld [vmem:[%s345_s28 + $0x18] sm:$0xff]  ;;  %v1443_v43 = vunpack.c.0.s8 %v531_v34  ;;  %s1294_s28 = smov 96   ;;  %s1297_s16 = smov 32  }
  0x19   : > { %693 = vst [vmem:[#allocation1] ss:$2 sm:$0xff] %v691_v4  ;;  %v357_v8 = vpack.c.bf16 %v355_v7, %v354_v6  ;;  %s1301_s23 = smov 113   ;;  %s1302_s24 = smov 111  }
  0x1a   : > { %1134 = vmatmul.msk.bf16.vlgmr.msra.gmra.mxu0 %vm359_vm1, %v356_v5  ;;  %s1809_s25 = smov 15  }
  0x2a   : > { %1135 = vmatmul.msk.bf16.gmra.mxu0 %vm359_vm1, %v357_v8 }
  0x97   : > { %v379_v9 = vpop.f32.mrf.mxu0 }
  0x98   : > { %v389_v10 = vpack.c.bf16 %v379_v9, %v379_v9 }
  0x9a   : > { %v410_v11 = vsel %vm366_vm0, %v389_v10, 0 }
  0x9b   : > { %419 = vmatpush.bf16.msra.mxu1 %v410_v11 }
  0x9e   : > { %1140 = vmatmul.msk.bf16.vlgmr.msra.gmra.mxu1 %vm359_vm1, %v1167_v12 }
  0x9f   : > { %v381_v13 = vpop.f32.mrf.mxu0 }
  0xa0   : > { %v390_v14 = vpack.c.bf16 %v381_v13, %v381_v13 }
  0xa2   : > { %v435_v15 = vsel %vm366_vm0, %v390_v14, 0 }
  0xa3   : > { %444 = vmatpush.bf16.msra.mxu2 %v435_v15 }
  0xa6   : > { %1145 = vmatmul.msk.bf16.vlgmr.msra.gmra.mxu2 %vm359_vm1, %v1168_v16 }
  0xa7   : > { %v384_v17 = vpop.f32.mrf.mxu0 }
  0xa8   : > { %v391_v18 = vpack.c.bf16 %v384_v17, %v384_v17 }
  0xaa   : > { %v460_v19 = vsel %vm366_vm0, %v391_v18, 0 }
  0xab   : > { %469 = vmatpush.bf16.msra.mxu3 %v460_v19 }
  0xae   : > { %1150 = vmatmul.msk.bf16.vlgmr.msra.gmra.mxu3 %vm359_vm1, %v1169_v20 }
  0xaf   : > { %v386_v21 = vpop.f32.mrf.mxu0 }
  0xb0   : > { %v392_v22 = vpack.c.bf16 %v386_v21, %v386_v21 }
  0xb2   : > { %v485_v23 = vsel %vm366_vm0, %v392_v22, 0 }
  0xb3   : > { %494 = vmatpush.bf16.msrb.mxu1 %v485_v23 }
  0xb6   : > { %1155 = vmatmul.msk.bf16.vlgmr.msrb.gmra.mxu1 %vm359_vm1, %v1170_v24 }
 0x11b   : > { %v421_v25 = vpop.f32.mrf.mxu1 }
 0x11c   : > { %v504_v31 = vrot.slane %v421_v25, 4 }
 0x123   : > { %v423_v26 = vpop.f32.mrf.mxu1 }
 0x124   : > { %v560_v58 = vrot.slane %v423_v26, 4 }
 0x129   : > { %v446_v29 = vpop.f32.mrf.mxu2 }
 0x12a   : > { %v516_v32 = vrot.slane %v446_v29, 4 }
 0x131   : > { %v471_v35 = vpop.f32.mrf.mxu3  ;;  %v448_v51 = vpop.f32.mrf.mxu2 }
 0x132   : > { %v501_v36 = vrot.slane %v471_v35, 4  ;;  %v505_v37 = vsel %vm502_vm2, %v471_v35, %v504_v31  ;;  %v572_v59 = vrot.slane %v448_v51, 4 }
 0x133   : > { %v513_v38 = vperm.slane %v505_v37, %v508_v30  ;;  %v496_v39 = vpop.f32.mrf.mxu1 }
 0x134   : > { %v503_v40 = vsel %vm502_vm2, %v501_v36, %v421_v25  ;;  %v514_v41 = vrot.slane %v496_v39, 4  ;;  %v517_v42 = vsel %vm502_vm2, %v496_v39, %v516_v32 }
 0x135   : > { %v509_v44 = vperm.slane %v503_v40, %v508_v30  ;;  %v540_v45 = vrot.slane %v513_v38, 4  ;;  %v525_v46 = vperm.slane %v517_v42, %v508_v30 }
 0x136   : > { %v515_v47 = vsel %vm502_vm2, %v514_v41, %v446_v29 }
 0x137   : > { %v528_v48 = vrot.slane %v509_v44, 4  ;;  %v521_v49 = vperm.slane %v515_v47, %v508_v30  ;;  %v538_v50 = vrot.slane %v525_v46, 4  ;;  %v541_v52 = vsel %vm502_vm2, %v525_v46, %v540_v45 }
 0x138   : > { %v1448_v53 = vperm.slane %v541_v52, %v1443_v43 }
 0x139   : > { %v526_v54 = vrot.slane %v521_v49, 4  ;;  %v473_v55 = vpop.f32.mrf.mxu3  ;;  %v539_v56 = vsel %vm502_vm2, %v538_v50, %v513_v38  ;;  %v529_v57 = vsel %vm502_vm2, %v521_v49, %v528_v48 }
 0x13a   : > { %v558_v60 = vrot.slane %v473_v55, 4  ;;  %635 = vrot.lane.b32.xlu1 %v1448_v53, %s1294_s28  ;;  %v545_v61 = vperm.slane %v539_v56, %v1443_v43  ;;  %v537_v63 = vperm.slane %v529_v57, %v1443_v43  ;;  %v561_v2 = vsel %vm502_vm2, %v473_v55, %v560_v58 }
 0x13b   : > { %v498_v62 = vpop.f32.mrf.mxu1  ;;  %v527_v0 = vsel %vm502_vm2, %v526_v54, %v509_v44  ;;  %v569_v10 = vperm.slane %v561_v2, %v508_v30  ;;  %v556_v36 = vrot.slane %v1448_v53, 4 }
 0x13c   : > { %v559_v1 = vsel %vm502_vm2, %v558_v60, %v423_v26  ;;  %v570_v3 = vrot.slane %v498_v62, 4  ;;  %v573_v4 = vsel %vm502_vm2, %v498_v62, %v572_v59  ;;  %627 = vrot.lane.b32.xlu0 %v545_v61, %s1295_s29  ;;  %v552_v7 = vrot.slane %v537_v63, 4 }
 0x13d   : > { %v565_v5 = vperm.slane %v559_v1, %v508_v30  ;;  %v581_v6 = vperm.slane %v573_v4, %v508_v30  ;;  %v533_v9 = vperm.slane %v527_v0, %v1443_v43  ;;  %v554_v17 = vrot.slane %v545_v61, 4 }
 0x13e   : > { %v571_v8 = vsel %vm502_vm2, %v570_v3, %v448_v51  ;;  %v553_v12 = vsel %vm502_vm2, 0.0, %v552_v7  ;;  %v596_v26 = vrot.slane %v569_v10, 4  ;;  %v557_v38 = vsel %vm502_vm2, 0.0, %v556_v36  ;;  %v695_v7 = vld.sshfl [vmem:[#allocation1 + $0x8] sm:$0xff pattern:$0x75316420] }
 0x13f   : > { %v594_v11 = vrot.slane %v581_v6, 4  ;;  %v584_v13 = vrot.slane %v565_v5, 4  ;;  %v577_v14 = vperm.slane %v571_v8, %v508_v30  ;;  %623 = vrot.lane.b32.xlu2 %v553_v12, %s1296_s14  ;;  %v550_v15 = vrot.slane %v533_v9, 4 }
 0x140   : > { %v555_v22 = vsel %vm502_vm2, 0.0, %v554_v17  ;;  %v597_v30 = vsel %vm502_vm2, %v581_v6, %v596_v26  ;;  %v839_v26 = vld [vmem:[%s1806_s7] sm:$0xf] }
 0x141   : > { %v595_v16 = vsel %vm502_vm2, %v594_v11, %v569_v10  ;;  %v551_v18 = vsel %vm502_vm2, 0.0, %v550_v15  ;;  %v582_v20 = vrot.slane %v577_v14, 4  ;;  %v585_v21 = vsel %vm502_vm2, %v577_v14, %v584_v13  ;;  %v1531_v15 = vld [vmem:[%s1803_s4 + $0x10] sm:$0x3] }
 0x142   : > { %619 = vrot.lane.b32.xlu1 %v537_v63, %s1297_s16  ;;  %v601_v19 = vperm.slane %v595_v16, %v1443_v43  ;;  %v593_v23 = vperm.slane %v585_v21, %v1443_v43  ;;  %v605_v33 = vperm.slane %v597_v30, %v1443_v43  ;;  %v694_v63 = vld.sshfl [vmem:[#allocation1] sm:$0xff pattern:$0x75316420]  ;;  %v718_v13 = vlaneseq }
 0x143   : > { %v583_v25 = vsel %vm502_vm2, %v582_v20, %v565_v5  ;;  %v822_v17 = vperm.slane %v1531_v15, 0 }
 0x144   : > { %615 = vrot.lane.b32.xlu0 %v551_v18, %s1811_s17  ;;  %v610_v24 = vrot.slane %v601_v19, 4  ;;  %v608_v28 = vrot.slane %v593_v23, 4  ;;  %v589_v29 = vperm.slane %v583_v25, %v1443_v43  ;;  %v612_v35 = vrot.slane %v605_v33, 4 }
 0x145   : > { %v1533_v16 = vand.u32 127, %v718_v13  ;;  %v823_v18 = vperm.slane %v1531_v15, 1 }
 0x146   : > { %v611_v27 = vsel %vm502_vm2, 0.0, %v610_v24  ;;  %v609_v31 = vsel %vm502_vm2, 0.0, %v608_v28  ;;  %v606_v32 = vrot.slane %v589_v29, 4  ;;  %v613_v37 = vsel %vm502_vm2, 0.0, %v612_v35  ;;  %v1557_v28 = vld [vmem:[%s1803_s4 + $0xe] sm:$0x3] }
 0x147   : > { %631 = vrot.lane.b32.xlu2 %v555_v22, %s1299_s21  ;;  %vm818_vm10 = vcmp.lt.s32.totalorder %v1533_v16, 111  ;;  %vm790_vm11 = vcmp.lt.s32.totalorder %v1533_v16, 113  ;;  %vm804_vm12 = vcmp.lt.s32.totalorder %v1533_v16, 112  ;;  %v808_v36 = vperm.slane %v1557_v28, 0 }
 0x148   : > { %v607_v34 = vsel %vm502_vm2, 0.0, %v606_v32  ;;  %vm776_vm13 = vcmp.lt.s32.totalorder %v1533_v16, 127  ;;  %vm762_vm14 = vcmp.lt.s32.totalorder %v1533_v16, 1  ;;  %vm748_vm15 = vcmp.lt.s32.totalorder %v1533_v16, 15 }
 0x149   : > { %vm720_vm1 = vcmp.lt.s32.totalorder %v1533_v16, 17  ;;  %vm734_vm2 = vcmp.lt.s32.totalorder %v1533_v16, 16 }
 0x14a   : > { %647 = vrot.lane.b32.xlu1 %v593_v23, %s1297_s16  ;;  %v1545_v23 = vld [vmem:[%s1803_s4 + $0xc] sm:$0x3]  ;;  %s1171_s16 = sshll.u32 %s1379_s13, 3 }
 0x14b   : > { %v794_v32 = vperm.slane %v1545_v23, 0 }
 0x14c   : > { %659 = vrot.lane.b32.xlu0 %v611_v27, %s1299_s21 }
 0x14f   : > { %651 = vrot.lane.b32.xlu2 %v609_v31, %s1296_s14  ;;  %v1307_v31 = vmov 0   ;;  %s1049_s14 = scalar_lea.hbm %s1808_s9, %s1171_s16  ;;  %s1248_s16 = scalar_lea.hbm %s1808_s9, 16 }
 0x150   : > { %1227 = vset.pattern.permute.xlu0 %v1307_v31 }
 0x152   : > { %655 = vrot.lane.b32.xlu1 %v601_v19, %s1295_s29 }
 0x154   : > { %643 = vrot.lane.b32.xlu0 %v607_v34, %s1811_s17 }
 0x157   : > { %663 = vrot.lane.b32.xlu2 %v605_v33, %s1294_s28  ;;  %s1306_s28 = smov 17   ;;  %v795_v33 = vperm.slane %v1545_v23, 1 }
 0x15a   : > { %667 = vrot.lane.b32.xlu1 %v613_v37, %s1300_s22  ;;  %v809_v37 = vperm.slane %v1557_v28, 1 }
 0x15c   : > { %639 = vrot.lane.b32.xlu0 %v557_v38, %s1300_s22 }
 0x199   : > { %v624_v41 = vpop.permute.xlu2 %623 }
 0x1a1   : > { %v632_v44 = vpop.permute.xlu2 %631 }
 0x1a9   : > { %v652_v49 = vpop.permute.xlu2 %651 }
 0x1ac   : > { %v636_v39 = vpop.permute.xlu1 %635 }
 0x1ae   : > { %v628_v40 = vpop.permute.xlu0 %627 }
 0x1b1   : > { %v664_v62 = vpop.permute.xlu2 %663 }
 0x1b4   : > { %v620_v42 = vpop.permute.xlu1 %619 }
 0x1b6   : > { %v616_v43 = vpop.permute.xlu0 %615 }
 0x1b7   : > { %v671_v47 = vsel %vm670_vm3, %v533_v9, %v616_v43 }
 0x1b8   : > { %v673_v48 = vsel %vm672_vm4, %v671_v47, %v620_v42 }
 0x1b9   : > { %v675_v50 = vsel %vm674_vm5, %v673_v48, %v624_v41  ;;  %v1586_v48 = vld [vmem:[%s1803_s4 + $0xa] sm:$0x3] }
 0x1ba   : > { %v677_v55 = vsel %vm676_vm6, %v675_v50, %v628_v40 }
 0x1bb   : > { %v679_v58 = vsel %vm678_vm7, %v677_v55, %v632_v44  ;;  %v1600_v55 = vld [vmem:[%s1803_s4 + $0x4] sm:$0x3] }
 0x1bc   : > { %v648_v45 = vpop.permute.xlu1 %647  ;;  %v681_v60 = vsel %vm680_vm8, %v679_v58, %v636_v39 }
 0x1be   : > { %v660_v46 = vpop.permute.xlu0 %659 }
 0x1c4   : > { %v656_v51 = vpop.permute.xlu1 %655 }
 0x1c6   : > { %v644_v52 = vpop.permute.xlu0 %643 }
 0x1c7   : > { %v684_v53 = vsel %vm670_vm3, %v589_v29, %v644_v52  ;;  %v1591_v52 = vld [vmem:[%s1803_s4 + $0x6] sm:$0x3]  ;;  %vm845_vm3 = vcmask 588800  }
 0x1c8   : > { %v685_v54 = vsel %vm672_vm4, %v684_v53, %v648_v45  ;;  %v780_v53 = vperm.slane %v1586_v48, 0  ;;  %v767_v58 = vperm.slane %v1591_v52, 1  ;;  %vm996_vm4 = vcmask 1041408  }
 0x1c9   : > { %v686_v56 = vsel %vm674_vm5, %v685_v54, %v652_v49  ;;  %v781_v54 = vperm.slane %v1586_v48, 1  ;;  %vm992_vm5 = vcmask 293888  }
 0x1ca   : > { %v687_v57 = vsel %vm676_vm6, %v686_v56, %v656_v51 }
 0x1cb   : > { %v688_v59 = vsel %vm678_vm7, %v687_v57, %v660_v46  ;;  %v766_v57 = vperm.slane %v1591_v52, 0 }
 0x1cc   : > { %v668_v1 = vpop.permute.xlu1 %667  ;;  %v689_v2 = vsel %vm680_vm8, %v688_v59, %v664_v62 }
 0x1cd   : > { %v690_v5 = vsel %vm682_vm9, %v689_v2, %v668_v1  ;;  %v753_v1 = vperm.slane %v1600_v55, 1 }
 0x1ce   : > { %v640_v61 = vpop.permute.xlu0 %639  ;;  %v701_v6 = vrot.slane %v690_v5, 4  ;;  %v1624_v5 = vld [vmem:[%s1803_s4] sm:$0x3] }
 0x1cf   : > { %v683_v0 = vsel %vm682_vm9, %v681_v60, %v640_v61 }
 0x1d0   : > { %v700_v3 = vrot.slane %v683_v0, 4  ;;  %v1496_v8 = vsel %vm366_vm0, %v695_v7, %v701_v6  ;;  %v752_v0 = vperm.slane %v1600_v55, 0 }
 0x1d2   : > { %v1487_v4 = vsel %vm366_vm0, %v694_v63, %v700_v3 }
 0x1d3   : > { %800 = vrot.lane.b32.xlu0 %v1487_v4, %s1300_s22  ;;  %786 = vrot.lane.b32.xlu1 %v1487_v4, %s1301_s23 }
 0x1d4   : > { %814 = vrot.lane.b32.xlu2 %v1487_v4, %s1302_s24 }
 0x1db   : > { %816 = vrot.lane.b32.xlu0 %v1496_v8, %s1302_s24  ;;  %744 = vrot.lane.b32.xlu1 %v1487_v4, %s1809_s25 }
 0x1dc   : > { %772 = vrot.lane.b32.xlu2 %v1487_v4, %s1304_s26 }
 0x1e3   : > { %758 = vrot.lane.b32.xlu0 %v1487_v4, %s1305_s27  ;;  %802 = vrot.lane.b32.xlu1 %v1496_v8, %s1300_s22 }
 0x1e4   : > { %714 = vrot.lane.b32.xlu2 %v1487_v4, %s1306_s28 }
 0x1eb   : > { %774 = vrot.lane.b32.xlu0 %v1496_v8, %s1304_s26  ;;  %760 = vrot.lane.b32.xlu1 %v1496_v8, %s1305_s27 }
 0x1ec   : > { %788 = vrot.lane.b32.xlu2 %v1496_v8, %s1301_s23 }
 0x1f3   : > { %716 = vrot.lane.b32.xlu0 %v1496_v8, %s1306_s28  ;;  %730 = vrot.lane.b32.xlu1 %v1487_v4, %s1811_s17 }
 0x1f4   : > { %746 = vrot.lane.b32.xlu2 %v1496_v8, %s1809_s25  ;;  %s1053_s25 = sshll.u32 %s1049_s14, 4  ;;  %s1054_s25 = int_to_ptr.hbm [resolvable:$true] %s1053_s25 }
 0x1fb   : > { %842 = vperm.xlu0 %1227, %v839_v26  }
 0x1fc   : > { %732 = vrot.lane.b32.xlu2 %v1496_v8, %s1811_s17  ;;  %s1815_s17 = smov 16  }
 0x22e   : > { %v815_v9 = vpop.permute.xlu2 %814 }
 0x236   : > { %v1524_v10 = vpop.permute.xlu2 %772 }
 0x23e   : > { %v1526_v14 = vpop.permute.xlu2 %714 }
 0x245   : > { %v801_v11 = vpop.permute.xlu0 %800  ;;  %v787_v12 = vpop.permute.xlu1 %786 }
 0x246   : > { %v789_v27 = vpop.permute.xlu2 %788 }
 0x247   : > { %v791_v38 = vsel %vm790_vm11, %v787_v12, %v789_v27  ;;  %v792_v39 = vsel %vm790_vm11, %v789_v27, %v787_v12 }
 0x248   : > { %v798_v44 = vmul.f32 %v794_v32, %v791_v38  ;;  %v799_v45 = vmul.f32 %v795_v33, %v792_v39 }
 0x24d   : > { %v817_v19 = vpop.permute.xlu0 %816  ;;  %v745_v20 = vpop.permute.xlu1 %744 }
 0x24e   : > { %v819_v21 = vsel %vm818_vm10, %v815_v9, %v817_v19  ;;  %v820_v22 = vsel %vm818_vm10, %v817_v19, %v815_v9  ;;  %v747_v51 = vpop.permute.xlu2 %746  ;;  %v1633_v9 = vld [vmem:[%s1803_s4 + $0x2] sm:$0x3]  ;;  %v724_v19 = vperm.slane %v1624_v5, 0 }
 0x24f   : > { %v826_v24 = vmul.f32 %v822_v17, %v819_v21  ;;  %v827_v25 = vmul.f32 %v823_v18, %v820_v22  ;;  %v749_v6 = vsel %vm748_vm15, %v745_v20, %v747_v51  ;;  %v750_v7 = vsel %vm748_vm15, %v747_v51, %v745_v20 }
 0x250   : > { %v725_v20 = vperm.slane %v1624_v5, 1  ;;  %v756_v21 = vmul.f32 %v752_v0, %v750_v7  ;;  %v757_v22 = vmul.f32 %v753_v1, %v749_v6 }
 0x251   : > { %v836_v29 = vpack.c.bf16 %v826_v24, %v826_v24  ;;  %v837_v30 = vpack.c.bf16 %v827_v25, %v827_v25 }
 0x253   : > { %v850_v34 = vsel %vm366_vm0, %v836_v29, 0  ;;  %v853_v35 = vsel %vm366_vm0, %v837_v30, 0 }
 0x254   : > { %858 = vmatpush.bf16.msrb.mxu2 %v850_v34  ;;  %871 = vmatpush.bf16.msrb.mxu3 %v853_v35 }
 0x255   : > { %v759_v40 = vpop.permute.xlu0 %758  ;;  %v803_v41 = vpop.permute.xlu1 %802 }
 0x256   : > { %v805_v42 = vsel %vm804_vm12, %v801_v11, %v803_v41  ;;  %v806_v43 = vsel %vm804_vm12, %v803_v41, %v801_v11  ;;  %v733_v24 = vpop.permute.xlu2 %732 }
 0x257   : > { %v812_v46 = vmul.f32 %v808_v36, %v805_v42  ;;  %v813_v47 = vmul.f32 %v809_v37, %v806_v43  ;;  %v838_v43 = vld [vmem:[%s1804_s5] sm:$0x3] }
 0x259   : > { %v834_v49 = vpack.c.bf16 %v812_v46, %v798_v44  ;;  %v835_v50 = vpack.c.bf16 %v813_v47, %v799_v45 }
 0x25b   : > { %859 = vmatpush.bf16.msrb.mxu2 %v834_v49  ;;  %872 = vmatpush.bf16.msrb.mxu3 %v835_v50 }
 0x25d   : > { %v775_v56 = vpop.permute.xlu0 %774  ;;  %v761_v59 = vpop.permute.xlu1 %760 }
 0x25e   : > { %v777_v60 = vsel %vm776_vm13, %v1524_v10, %v775_v56  ;;  %v778_v61 = vsel %vm776_vm13, %v775_v56, %v1524_v10  ;;  %v763_v62 = vsel %vm762_vm14, %v759_v40, %v761_v59  ;;  %v764_v63 = vsel %vm762_vm14, %v761_v59, %v759_v40 }
 0x25f   : > { %v784_v2 = vmul.f32 %v780_v53, %v777_v60  ;;  %v785_v3 = vmul.f32 %v781_v54, %v778_v61  ;;  %v770_v10 = vmul.f32 %v766_v57, %v764_v63  ;;  %v771_v11 = vmul.f32 %v767_v58, %v763_v62  ;;  %v986_v60 = vld [vmem:[%s1807_s8] sm:$0xf] }
 0x261   : > { %v832_v12 = vpack.c.bf16 %v784_v2, %v1487_v4  ;;  %v833_v13 = vpack.c.bf16 %v785_v3, %v1496_v8  ;;  %v738_v4 = vperm.slane %v1633_v9, 0  ;;  %v739_v8 = vperm.slane %v1633_v9, 1 }
 0x262   : > { %v830_v27 = vpack.c.bf16 %v770_v10, %v756_v21  ;;  %v831_v29 = vpack.c.bf16 %v771_v11, %v757_v22 }
 0x263   : > { %860 = vmatpush.bf16.msrb.mxu2 %v832_v12  ;;  %873 = vmatpush.bf16.msrb.mxu3 %v833_v13 }
 0x265   : > { %v717_v25 = vpop.permute.xlu0 %716  ;;  %v731_v26 = vpop.permute.xlu1 %730 }
 0x266   : > { %v721_v30 = vsel %vm720_vm1, %v1526_v14, %v717_v25  ;;  %v722_v31 = vsel %vm720_vm1, %v717_v25, %v1526_v14  ;;  %v735_v34 = vsel %vm734_vm2, %v731_v26, %v733_v24  ;;  %v736_v35 = vsel %vm734_vm2, %v733_v24, %v731_v26 }
 0x267   : > { %v728_v38 = vmul.f32 %v724_v19, %v722_v31  ;;  %v729_v39 = vmul.f32 %v725_v20, %v721_v30  ;;  %v742_v40 = vmul.f32 %v738_v4, %v736_v35  ;;  %v743_v41 = vmul.f32 %v739_v8, %v735_v34  ;;  %861 = vmatpush.bf16.msrb.mxu2 %v830_v27 }
 0x268   : > { %874 = vmatpush.bf16.msrb.mxu3 %v831_v29 }
 0x269   : > { %v828_v14 = vpack.c.bf16 %v742_v40, %v728_v38  ;;  %v829_v42 = vpack.c.bf16 %v743_v41, %v729_v39 }
 0x26b   : > { %862 = vmatpush.bf16.msrb.mxu2 %v828_v14 }
 0x26c   : > { %875 = vmatpush.bf16.msrb.mxu3 %v829_v42 }
 0x26d   : > { %v843_v44 = vpop.permute.xlu0 %842 }
 0x26e   : > { %1156 = vmatmul.msk.bf16.vlgmr.msrb.gmra.mxu2 %vm845_vm3, %v838_v43 }
 0x26f   : > { %1157 = vmatmul.msk.bf16.vlgmr.msrb.gmra.mxu3 %vm845_vm3, %v838_v43 }
 0x2f1   : > { %v864_v45 = vpop.f32.mrf.mxu2 }
 0x2f2   : > { %v865_v46 = vadd.f32 %v864_v45, %v843_v44  ;;  %v877_v47 = vpop.f32.mrf.mxu3 }
 0x2f3   : > { %v878_v49 = vadd.f32 %v877_v47, %v843_v44 }
 0x2f4   : > { %v881_v50 = vmax.f32 %v865_v46, 0.0 }
 0x2f5   : > { %v882_v51 = vmax.f32 %v878_v49, 0.0 }
 0x2f6   : > { %931 = vrot.lane.b32.xlu0 %v881_v50, %s1300_s22  ;;  %939 = vrot.lane.b32.xlu1 %v881_v50, %s1302_s24 }
 0x2f7   : > { %941 = vrot.lane.b32.xlu2 %v882_v51, %s1302_s24 }
 0x2f9   : > { %v866_v56 = vpop.f32.mrf.mxu2 }
 0x2fa   : > { %v879_v59 = vpop.f32.mrf.mxu3 }
 0x2fe   : > { %915 = vrot.lane.b32.xlu1 %v881_v50, %s1304_s26  ;;  %925 = vrot.lane.b32.xlu0 %v882_v51, %s1301_s23 }
 0x2ff   : > { %917 = vrot.lane.b32.xlu2 %v882_v51, %s1304_s26  ;;  %s1816_s26 = smov 15  }
 0x306   : > { %907 = vrot.lane.b32.xlu0 %v881_v50, %s1305_s27  ;;  %933 = vrot.lane.b32.xlu1 %v882_v51, %s1300_s22 }
 0x307   : > { %923 = vrot.lane.b32.xlu2 %v881_v50, %s1301_s23 }
 0x30e   : > { %885 = vrot.lane.b32.xlu0 %v882_v51, %s1306_s28  ;;  %891 = vrot.lane.b32.xlu1 %v881_v50, %s1815_s17 }
 0x30f   : > { %893 = vrot.lane.b32.xlu2 %v882_v51, %s1815_s17 }
 0x316   : > { %989 = vperm.xlu0 %1227, %v986_v60   ;;  %909 = vrot.lane.b32.xlu1 %v882_v51, %s1305_s27  ;;  %s338_s27 = sand.u32 1, %s1282_s10  }
 0x317   : > { %883 = vrot.lane.b32.xlu2 %v881_v50, %s1306_s28  ;;  %s1129_s28 = sshll.u32 %s338_s27, 3  ;;  %s1038_s13 = scalar_lea.sflag [#allocation3], %s338_s27 }
 0x318   : > { %s340_s17 = scalar_lea.vmem [#allocation2], %s1129_s28 }
 0x319   : > { %s1051_s24 = sshll.u32 %s340_s17, 4  ;;  %s1052_s24 = int_to_ptr.vmem [resolvable:$true] %s1051_s24 }
 0x31e   : > { %899 = vrot.lane.b32.xlu1 %v881_v50, %s1816_s26 }
 0x31f   : > { %901 = vrot.lane.b32.xlu2 %v882_v51, %s1816_s26  ;;  %s1242_s26 = sshra.s32 %s1054_s25, 4  ;;  %s1243_s26 = int_to_ptr.hbm [resolvable:$true] %s1242_s26 }
 0x320   : > { %s1244_s22 = scalar_lea.hbm %s1243_s26, 8  ;;  %p1249_p0 = scmp.lt.s32.totalorder %s1243_s26, %s1808_s9 }
 0x321   : > { %p1245_p11 = scmp.ne.s32.totalorder %s1243_s26, %s1244_s22  ;;  %p1250_p1 = scmp.lt.s32.totalorder %s1248_s16, %s1244_s22 }
 0x323   : > { %p1246_p12 = pnand %p1245_p11, %p1396_p5  ;;  %p1251_p2 = por %p1250_p1, %p1249_p0 }
 0x325   : > { %p1247_p13 = pneg %p1246_p12 }
 0x327   : > { %p1252_p3 = pnand %p1251_p2, %p1247_p13 }
 0x351   : > { %v942_v61 = vpop.permute.xlu2 %941 }
 0x359   : > { %v918_v62 = vpop.permute.xlu2 %917 }
 0x361   : > { %v924_v24 = vpop.permute.xlu2 %923 }
 0x368   : > { %v940_v63 = vpop.permute.xlu1 %939  ;;  %v932_v10 = vpop.permute.xlu0 %931 }
 0x369   : > { %v943_v2 = vsel %vm818_vm10, %v940_v63, %v942_v61  ;;  %v944_v3 = vsel %vm818_vm10, %v942_v61, %v940_v63 }
 0x36a   : > { %v945_v6 = vmul.f32 %v943_v2, %v822_v17  ;;  %v946_v7 = vmul.f32 %v944_v3, %v823_v18 }
 0x36c   : > { %v984_v11 = vpack.c.bf16 %v946_v7, %v946_v7  ;;  %v983_v12 = vpack.c.bf16 %v945_v6, %v945_v6 }
 0x36e   : > { %v998_v13 = vsel %vm996_vm4, %v983_v12, 0  ;;  %v1001_v21 = vsel %vm996_vm4, %v984_v11, 0 }
 0x36f   : > { %1008 = vmatpush.bf16.msrb.mxu0 %v998_v13  ;;  %1021 = vmatpush.bf16.msra.mxu1 %v1001_v21 }
 0x370   : > { %v916_v22 = vpop.permute.xlu1 %915  ;;  %v926_v18 = vpop.permute.xlu0 %925 }
 0x371   : > { %v919_v25 = vsel %vm776_vm13, %v916_v22, %v918_v62  ;;  %v920_v26 = vsel %vm776_vm13, %v918_v62, %v916_v22  ;;  %v927_v29 = vsel %vm790_vm11, %v924_v24, %v926_v18  ;;  %v928_v30 = vsel %vm790_vm11, %v926_v18, %v924_v24 }
 0x372   : > { %v921_v15 = vmul.f32 %v919_v25, %v780_v53  ;;  %v922_v17 = vmul.f32 %v920_v26, %v781_v54  ;;  %v894_v54 = vpop.permute.xlu2 %893  ;;  %v929_v39 = vmul.f32 %v927_v29, %v794_v32  ;;  %v930_v40 = vmul.f32 %v928_v30, %v795_v33 }
 0x374   : > { %v961_v35 = vrot.slane %v921_v15, 4  ;;  %v962_v38 = vrot.slane %v922_v17, 4 }
 0x376   : > { %v975_v42 = vsel %vm366_vm0, %v881_v50, %v961_v35  ;;  %v976_v44 = vsel %vm366_vm0, %v882_v51, %v962_v38 }
 0x378   : > { %v934_v27 = vpop.permute.xlu1 %933  ;;  %v908_v46 = vpop.permute.xlu0 %907 }
 0x379   : > { %v935_v31 = vsel %vm804_vm12, %v932_v10, %v934_v27  ;;  %v936_v34 = vsel %vm804_vm12, %v934_v27, %v932_v10 }
 0x37a   : > { %v937_v48 = vmul.f32 %v935_v31, %v808_v36  ;;  %v938_v53 = vmul.f32 %v936_v34, %v809_v37  ;;  %v884_v32 = vpop.permute.xlu2 %883 }
 0x37c   : > { %v967_v41 = vrot.slane %v937_v48, 4  ;;  %v968_v14 = vrot.slane %v938_v53, 4 }
 0x37e   : > { %v977_v43 = vsel %vm366_vm0, %v929_v39, %v967_v41  ;;  %v978_v36 = vsel %vm366_vm0, %v930_v40, %v968_v14 }
 0x37f   : > { %v981_v45 = vpack.c.bf16 %v977_v43, %v975_v42  ;;  %v982_v28 = vpack.c.bf16 %v978_v36, %v976_v44 }
 0x380   : > { %v892_v37 = vpop.permute.xlu1 %891  ;;  %v886_v49 = vpop.permute.xlu0 %885 }
 0x381   : > { %1009 = vmatpush.bf16.msrb.mxu0 %v981_v45  ;;  %1022 = vmatpush.bf16.msra.mxu1 %v982_v28  ;;  %v895_v23 = vsel %vm734_vm2, %v892_v37, %v894_v54  ;;  %v896_v33 = vsel %vm734_vm2, %v894_v54, %v892_v37  ;;  %v887_v60 = vsel %vm720_vm1, %v884_v32, %v886_v49 }
 0x382   : > { %v897_v56 = vmul.f32 %v896_v33, %v738_v4  ;;  %v898_v59 = vmul.f32 %v895_v23, %v739_v8  ;;  %v888_v61 = vsel %vm720_vm1, %v886_v49, %v884_v32  ;;  %v902_v2 = vpop.permute.xlu2 %901  ;;  %v890_v4 = vmul.f32 %v887_v60, %v725_v20 }
 0x383   : > { %v889_v9 = vmul.f32 %v888_v61, %v724_v19 }
 0x384   : > { %v949_v3 = vrot.slane %v897_v56, 4  ;;  %v950_v6 = vrot.slane %v898_v59, 4 }
 0x386   : > { %v971_v19 = vsel %vm366_vm0, %v889_v9, %v949_v3  ;;  %v972_v20 = vsel %vm366_vm0, %v890_v4, %v950_v6 }
 0x388   : > { %v910_v47 = vpop.permute.xlu1 %909  ;;  %v990_v55 = vpop.permute.xlu0 %989 }
 0x389   : > { %v911_v50 = vsel %vm762_vm14, %v908_v46, %v910_v47  ;;  %v912_v51 = vsel %vm762_vm14, %v910_v47, %v908_v46 }
 0x38a   : > { %v913_v62 = vmul.f32 %v912_v51, %v766_v57  ;;  %v914_v63 = vmul.f32 %v911_v50, %v767_v58 }
 0x38c   : > { %v955_v57 = vrot.slane %v913_v62, 4  ;;  %v956_v52 = vrot.slane %v914_v63, 4 }
 0x390   : > { %v900_v7 = vpop.permute.xlu1 %899 }
 0x391   : > { %v903_v8 = vsel %vm748_vm15, %v900_v7, %v902_v2  ;;  %v904_v10 = vsel %vm748_vm15, %v902_v2, %v900_v7 }
 0x392   : > { %v905_v58 = vmul.f32 %v904_v10, %v752_v0  ;;  %v906_v11 = vmul.f32 %v903_v8, %v753_v1  ;;  %v985_v0 = vld [vmem:[%s1805_s6] sm:$0x3] }
 0x394   : > { %v973_v5 = vsel %vm366_vm0, %v905_v58, %v955_v57  ;;  %v974_v12 = vsel %vm366_vm0, %v906_v11, %v956_v52 }
 0x395   : > { %v979_v16 = vpack.c.bf16 %v973_v5, %v971_v19  ;;  %v980_v13 = vpack.c.bf16 %v974_v12, %v972_v20 }
 0x397   : > { %1010 = vmatpush.bf16.msrb.mxu0 %v979_v16  ;;  %1023 = vmatpush.bf16.msra.mxu1 %v980_v13 }
 0x39a   : > { %1158 = vmatmul.msk.bf16.vlgmr.msrb.gmra.mxu0 %vm992_vm5, %v985_v0  ;;  %1159 = vmatmul.msk.bf16.vlgmr.msra.gmra.mxu1 %vm992_vm5, %v985_v0 }
 0x417   : > { %v1012_v1 = vpop.f32.mrf.mxu0  ;;  %v1025_v21 = vpop.f32.mrf.mxu1 }
 0x418   : > { %v1013_v22 = vadd.f32 %v1012_v1, %v990_v55  ;;  %v1026_v24 = vadd.f32 %v1025_v21, %v990_v55 }
 0x41a   : > { %v1030_v25 = vmax.f32 %v1026_v24, 0.0  ;;  %v1029_v26 = vmax.f32 %v1013_v22, 0.0 }
 0x41c   : > { %v1033_v15 = vrot.slane %v1030_v25, 4 }
 0x41e   : > { %v1034_v17 = vsel %vm366_vm0, %v1029_v26, %v1033_v15 }
 0x41f   : > { %v1027_v18 = vpop.f32.mrf.mxu1  ;;  %v1014_v27 = vpop.f32.mrf.mxu0  ;;  %1036 = vst [vmem:[%s340_s17] sm:$0xff] %v1034_v17 }
 0x420   : > { %1255 = shalt.err (!%p1252_p3)
}
 0x421   : > { %1172 = dma.vmem_to_hbm [thread:$0]  (%p1396_p5), %s1052_s24, 128, %s1054_s25, %s1038_s13  }
 0x422 PF: > { %p1178_p4 = scmp.ge.s32.totalorder %s1290_s12, 2  ;;  %s1065_s27 = sand.u32 1, %s1278_s30  }
 0x423   : > { %s1066_s14 = scalar_lea.sflag [#allocation3], %s1065_s27 }
 0x424   : > { %p1175_p7 = pnand %p1178_p4, %p1400_p6 }
 0x426   : > { %p1176_p8 = pneg %p1175_p7 }
 0x428   : > { %1273 = dma.done.wait (%p1176_p8), %s1066_s14, 128  }
 0x429   : > { %1275 = vsyncadd (%p1176_p8), %s1066_s14, 4294967168  ;;  %p19_p9 = scmp.ge.s32.totalorder %s1383_s15, 4   ;;  %s1817_s30 = smov %s1282_s10 }
 0x42a   : > { %s1818_s10 = smov %s1286_s11  ;;  %s1819_s11 = smov %s1394_s18 }
 0x42b   : > { %s1820_s12 = smov %s1383_s15  ;;  %21 = sbr.rel (!%p19_p9) target bundleno = 3 (0x3), region = 94 }
 0x430   :  { %1072 = vsyncpa [#allocation3], 1 }
 0x431   :  { %1074 = vsyncpa [#allocation3 + $0x1], 1 }

</bundles_post_ra>
